<compile_context>
chip_gen: v7x
topology: tpu7x:2x2x1
jax: 0.10.0
libtpu: 0.0.40
codegen_flags: <defaults>
</compile_context>

<pallas_src>
import functools

import jax
import jax.numpy as jnp
import numpy as np
from jax.experimental import pallas as pl
from jax.experimental.pallas import tpu as pltpu


def eda_kernel(xs_ref, zeros_ref,
               wih_e_ref, whh_e_ref, b_e_ref,
               wih_d_ref, whh_d_ref, b_d_ref,
               wmuvar_ref, bmuvar_ref,
               y_ref, kld_ref,
               hs_ref,
               *, B, T, S, H):
    whh_e = whh_e_ref[...]
    whh_d = whh_d_ref[...]

    # ---- hoisted input projections: one batched matmul each, off the serial chain ----
    # xs_ref is (T*B, D) time-major; zeros_ref is (S*B, D) time-major.
    xproj = (jnp.dot(xs_ref[...], wih_e_ref[...], preferred_element_type=jnp.float32)
             + b_e_ref[...])                                   # (T*B, 4H)
    zproj = (jnp.dot(zeros_ref[...], wih_d_ref[...], preferred_element_type=jnp.float32)
             + b_d_ref[...])                                   # (S*B, 4H)

    def cell(pre_gates, h, c, whh):
        # Gate column order is [i, f, o, g] (permuted in the wrapper), so the three
        # sigmoid gates form ONE contiguous 3H slice and tanh(g) is one H slice.
        gates = pre_gates + jnp.dot(h, whh, preferred_element_type=jnp.float32)
        sig = jax.nn.sigmoid(gates[:, 0:3 * H])   # i | f | o in one EUP pass
        g = jnp.tanh(gates[:, 3 * H:4 * H])       # g in one EUP pass
        i = sig[:, 0:H]
        f = sig[:, H:2 * H]
        o = sig[:, 2 * H:3 * H]
        c_new = f * c + i * g
        h_new = o * jnp.tanh(c_new)
        return h_new, c_new

    h = jnp.zeros((B, H), jnp.float32)
    c = jnp.zeros((B, H), jnp.float32)

    # ---- encoder recurrence (serial; only h @ whh_e per step) ----
    # TODO(synk): for large T, tile the time axis with a grid (BlockSpec over T,
    # h/c carried in VMEM scratch, axis marked "arbitrary") instead of whole-array
    # residency + static unroll; also re-budget tiles for v7x's 64 MiB VMEM.
    for t in range(T):
        h, c = cell(xproj[t * B:(t + 1) * B, :], h, c, whh_e)

    # ---- decoder recurrence, seeded with encoder final (h, c); stash hiddens ----
    for t in range(S):
        h, c = cell(zproj[t * B:(t + 1) * B, :], h, c, whh_d)
        hs_ref[t * B:(t + 1) * B, :] = h

    # ---- deferred mu/logvar projection: one matmul, one output store ----
    hidden = hs_ref[...]                                       # (S*B, H)
    y = (jnp.dot(hidden, wmuvar_ref[...], preferred_element_type=jnp.float32)
         + bmuvar_ref[...])                                    # (S*B, 2H) = [mu | log_var]
    y_ref[...] = y

    # ---- KLD: single cross-lane reduction in the epilogue ----
    mu = y[:, 0:H]
    lv = y[:, H:2 * H]
    kld_elem = 1.0 + lv - mu * mu - jnp.exp(lv)
    kld_ref[...] = (-0.5 * jnp.sum(kld_elem) / np.float32(S * B * H)).reshape(1, 1)


def _reorder_gates(w):
    """Permute the 4H gate axis from PyTorch order [i, f, g, o] to [i, f, o, g]."""
    i, f, g, o = jnp.split(w, 4, axis=-1)
    return jnp.concatenate([i, f, o, g], axis=-1)


def eda_forward(xs, zeros, params, temp='None'):
    B, T, D = xs.shape
    S = zeros.shape[1]

    # Present sequences time-major so each recurrent step reads a contiguous row block.
    xs_tb = jnp.transpose(xs, (1, 0, 2)).reshape(T * B, D)
    zeros_sb = jnp.transpose(zeros, (1, 0, 2)).reshape(S * B, D)

    # One-time host-side weight plumbing (outside the kernel / serial chain):
    #   * permute gate columns to [i, f, o, g] so sigmoid gates are contiguous,
    #   * fuse linearmu / linearvar into a single (D, 2D) projection.
    wih_e = _reorder_gates(params['w_ih_e_T'])
    whh_e = _reorder_gates(params['w_hh_e_T'])
    b_e = _reorder_gates(params['b_e'])
    wih_d = _reorder_gates(params['w_ih_d_T'])
    whh_d = _reorder_gates(params['w_hh_d_T'])
    b_d = _reorder_gates(params['b_d'])
    wmuvar = jnp.concatenate([params['w_mu_T'], params['w_var_T']], axis=1)   # (D, 2D)
    bmuvar = jnp.concatenate([params['b_mu'], params['b_var']], axis=1)       # (1, 2D)

    inputs = (xs_tb, zeros_sb,
              wih_e, whh_e, b_e,
              wih_d, whh_d, b_d,
              wmuvar, bmuvar)

    vmem = pl.BlockSpec(memory_space=pltpu.MemorySpace.VMEM)
    kernel = functools.partial(eda_kernel, B=B, T=T, S=S, H=D)

    # TODO(synk): if B grows, pad/pack the batch toward 8 sublanes and add a
    # "parallel" batch grid axis so v7x's two TensorCores run independent shards.
    y, kld = pl.pallas_call(
        kernel,
        out_shape=(jax.ShapeDtypeStruct((S * B, 2 * D), jnp.float32),
                   jax.ShapeDtypeStruct((1, 1), jnp.float32)),
        in_specs=[vmem] * len(inputs),
        out_specs=(vmem, vmem),
        scratch_shapes=[pltpu.VMEM((S * B, D), jnp.float32)],
    )(*inputs)

    # Layout plumbing: (S*B, 2D) time-major slab -> (B, S, D) mu / log_var.
    y = y.reshape(S, B, 2 * D).transpose(1, 0, 2)
    mu = y[:, :, :D]
    log_var = y[:, :, D:]
    kld = kld[0, 0]

    if temp == 'softplus':
        # optional branch of forward(); elementwise glue on kernel outputs
        return mu, -jax.nn.softplus(log_var), kld
    return mu, log_var, kld


# ---------------- pure-JAX reference (for correctness check only) ----------------
def eda_forward_ref(xs, zeros, p):
    H = xs.shape[-1]

    def run_lstm(seq, h, c, wih, whh, b):
        hs = []
        for t in range(seq.shape[1]):
            g = seq[:, t, :] @ wih + h @ whh + b
            i = jax.nn.sigmoid(g[:, :H])
            f = jax.nn.sigmoid(g[:, H:2 * H])
            gg = jnp.tanh(g[:, 2 * H:3 * H])
            o = jax.nn.sigmoid(g[:, 3 * H:])
            c = f * c + i * gg
            h = o * jnp.tanh(c)
            hs.append(h)
        return jnp.stack(hs, axis=1), h, c

    B = xs.shape[0]
    h0 = jnp.zeros((B, H), jnp.float32)
    c0 = jnp.zeros((B, H), jnp.float32)
    _, he, ce = run_lstm(xs, h0, c0, p['w_ih_e_T'], p['w_hh_e_T'], p['b_e'])
    hid, _, _ = run_lstm(zeros, he, ce, p['w_ih_d_T'], p['w_hh_d_T'], p['b_d'])
    mu = hid @ p['w_mu_T'] + p['b_mu']
    log_var = hid @ p['w_var_T'] + p['b_var']
    kld = -0.5 * jnp.mean(1.0 + log_var - mu ** 2 - jnp.exp(log_var))
    return mu, log_var, kld


def init_params(key, n_units):
    H = n_units
    bound = 1.0 / np.sqrt(H)
    keys = jax.random.split(key, 12)

    def u(kk, shape):
        return jax.random.uniform(kk, shape, jnp.float32, -bound, bound)

    return {
        # encoder LSTM (weights pre-transposed to (in, 4H)); bias = b_ih + b_hh
        'w_ih_e_T': u(keys[0], (H, 4 * H)),
        'w_hh_e_T': u(keys[1], (H, 4 * H)),
        'b_e':      u(keys[2], (1, 4 * H)) + u(keys[3], (1, 4 * H)),
        # decoder LSTM
        'w_ih_d_T': u(keys[4], (H, 4 * H)),
        'w_hh_d_T': u(keys[5], (H, 4 * H)),
        'b_d':      u(keys[6], (1, 4 * H)) + u(keys[7], (1, 4 * H)),
        # linearmu / linearvar (pre-transposed to (in, out))
        'w_mu_T':   u(keys[8], (H, H)),
        'b_mu':     u(keys[9], (1, H)),
        'w_var_T':  u(keys[10], (H, H)),
        'b_var':    u(keys[11], (1, H)),
    }


if __name__ == "__main__":
    key = jax.random.PRNGKey(0)
    B, T, n_units = 2, 8, 32
    max_n_speakers = 3
    S = max_n_speakers + 1

    k_p, k_x = jax.random.split(key)
    params = init_params(k_p, n_units)
    xs = jax.random.normal(k_x, (B, T, n_units), jnp.float32)
    zeros = jnp.zeros((B, S, n_units), jnp.float32)

    mu, log_var, kld = eda_forward(xs, zeros, params)
    jax.block_until_ready((mu, log_var, kld))

    mu_r, lv_r, kld_r = eda_forward_ref(xs, zeros, params)
    np.testing.assert_allclose(np.asarray(mu), np.asarray(mu_r), atol=1e-4, rtol=1e-4)
    np.testing.assert_allclose(np.asarray(log_var), np.asarray(lv_r), atol=1e-4, rtol=1e-4)
    np.testing.assert_allclose(np.asarray(kld), np.asarray(kld_r), atol=1e-4, rtol=1e-4)

    # exercise the optional softplus branch of forward() as well
    mu2, neg_sp, kld2 = eda_forward(xs, zeros, params, temp='softplus')
    jax.block_until_ready((mu2, neg_sp, kld2))

    print("KERNEL_OK")
</pallas_src>

<mosaic_0001>
module attributes {stable_mosaic.version = 11 : i64} {
  func.func @eda_kernel(%arg0: memref<16x32xf32, #tpu.memory_space<vmem>>, %arg1: memref<8x32xf32, #tpu.memory_space<vmem>>, %arg2: memref<32x128xf32, #tpu.memory_space<vmem>>, %arg3: memref<32x128xf32, #tpu.memory_space<vmem>>, %arg4: memref<1x128xf32, #tpu.memory_space<vmem>>, %arg5: memref<32x128xf32, #tpu.memory_space<vmem>>, %arg6: memref<32x128xf32, #tpu.memory_space<vmem>>, %arg7: memref<1x128xf32, #tpu.memory_space<vmem>>, %arg8: memref<32x64xf32, #tpu.memory_space<vmem>>, %arg9: memref<1x64xf32, #tpu.memory_space<vmem>>, %arg10: memref<8x64xf32, #tpu.memory_space<vmem>>, %arg11: memref<1x1xf32, #tpu.memory_space<vmem>>, %arg12: memref<8x32xf32, #tpu.memory_space<vmem>>) attributes {dimension_semantics = [], scalar_prefetch = 0 : i64, scratch_operands = 1 : i64, tpu.core_type = #tpu.core_type<tc>} {
    %c0 = arith.constant 0 : index
    %c0_0 = arith.constant 0 : index
    %0 = vector.load %arg3[%c0, %c0_0] : memref<32x128xf32, #tpu.memory_space<vmem>>, vector<32x128xf32>
    %c0_1 = arith.constant 0 : index
    %c0_2 = arith.constant 0 : index
    %1 = vector.load %arg6[%c0_1, %c0_2] : memref<32x128xf32, #tpu.memory_space<vmem>>, vector<32x128xf32>
    %c0_3 = arith.constant 0 : index
    %c0_4 = arith.constant 0 : index
    %2 = vector.load %arg0[%c0_3, %c0_4] : memref<16x32xf32, #tpu.memory_space<vmem>>, vector<16x32xf32>
    %c0_5 = arith.constant 0 : index
    %c0_6 = arith.constant 0 : index
    %3 = vector.load %arg2[%c0_5, %c0_6] : memref<32x128xf32, #tpu.memory_space<vmem>>, vector<32x128xf32>
    %cst = arith.constant dense<0.000000e+00> : vector<16x128xf32>
    %4 = tpu.matmul %2, %3, %cst {dimension_numbers = #tpu.dot_dimension_numbers<[1], [0], [0], [1], [0, 0, 1, 1], [], []>} : vector<16x32xf32>, vector<32x128xf32>, vector<16x128xf32> -> vector<16x128xf32>
    %c0_7 = arith.constant 0 : index
    %c0_8 = arith.constant 0 : index
    %5 = vector.load %arg4[%c0_7, %c0_8] : memref<1x128xf32, #tpu.memory_space<vmem>>, vector<1x128xf32>
    %6 = vector.broadcast %5 : vector<1x128xf32> to vector<16x128xf32>
    %7 = arith.addf %4, %6 : vector<16x128xf32>
    %c0_9 = arith.constant 0 : index
    %c0_10 = arith.constant 0 : index
    %8 = vector.load %arg1[%c0_9, %c0_10] : memref<8x32xf32, #tpu.memory_space<vmem>>, vector<8x32xf32>
    %c0_11 = arith.constant 0 : index
    %c0_12 = arith.constant 0 : index
    %9 = vector.load %arg5[%c0_11, %c0_12] : memref<32x128xf32, #tpu.memory_space<vmem>>, vector<32x128xf32>
    %cst_13 = arith.constant dense<0.000000e+00> : vector<8x128xf32>
    %10 = tpu.matmul %8, %9, %cst_13 {dimension_numbers = #tpu.dot_dimension_numbers<[1], [0], [0], [1], [0, 0, 1, 1], [], []>} : vector<8x32xf32>, vector<32x128xf32>, vector<8x128xf32> -> vector<8x128xf32>
    %c0_14 = arith.constant 0 : index
    %c0_15 = arith.constant 0 : index
    %11 = vector.load %arg7[%c0_14, %c0_15] : memref<1x128xf32, #tpu.memory_space<vmem>>, vector<1x128xf32>
    %12 = vector.broadcast %11 : vector<1x128xf32> to vector<8x128xf32>
    %13 = arith.addf %10, %12 : vector<8x128xf32>
    %cst_16 = arith.constant 0.000000e+00 : f32
    %14 = vector.broadcast %cst_16 : f32 to vector<2x32xf32>
    %cst_17 = arith.constant 0.000000e+00 : f32
    %15 = vector.broadcast %cst_17 : f32 to vector<2x32xf32>
    %16 = vector.extract_strided_slice %7 {offsets = [0, 0], sizes = [2, 128], strides = [1, 1]} : vector<16x128xf32> to vector<2x128xf32>
    %cst_18 = arith.constant dense<0.000000e+00> : vector<2x128xf32>
    %17 = tpu.matmul %14, %0, %cst_18 {dimension_numbers = #tpu.dot_dimension_numbers<[1], [0], [0], [1], [0, 0, 1, 1], [], []>} : vector<2x32xf32>, vector<32x128xf32>, vector<2x128xf32> -> vector<2x128xf32>
    %18 = arith.addf %16, %17 : vector<2x128xf32>
    %19 = vector.extract_strided_slice %18 {offsets = [0, 0], sizes = [2, 96], strides = [1, 1]} : vector<2x128xf32> to vector<2x96xf32>
    %20 = arith.negf %19 : vector<2x96xf32>
    %21 = math.exp %20 : vector<2x96xf32>
    %cst_19 = arith.constant 1.000000e+00 : f32
    %22 = vector.broadcast %cst_19 : f32 to vector<2x96xf32>
    %23 = arith.addf %22, %21 : vector<2x96xf32>
    %24 = arith.divf %22, %23 : vector<2x96xf32>
    %25 = vector.extract_strided_slice %18 {offsets = [0, 96], sizes = [2, 32], strides = [1, 1]} : vector<2x128xf32> to vector<2x32xf32>
    %26 = math.tanh %25 : vector<2x32xf32>
    %27 = vector.extract_strided_slice %24 {offsets = [0, 0], sizes = [2, 32], strides = [1, 1]} : vector<2x96xf32> to vector<2x32xf32>
    %28 = vector.extract_strided_slice %24 {offsets = [0, 32], sizes = [2, 32], strides = [1, 1]} : vector<2x96xf32> to vector<2x32xf32>
    %29 = vector.extract_strided_slice %24 {offsets = [0, 64], sizes = [2, 32], strides = [1, 1]} : vector<2x96xf32> to vector<2x32xf32>
    %30 = arith.mulf %28, %15 : vector<2x32xf32>
    %31 = arith.mulf %27, %26 : vector<2x32xf32>
    %32 = arith.addf %30, %31 : vector<2x32xf32>
    %33 = math.tanh %32 : vector<2x32xf32>
    %34 = arith.mulf %29, %33 : vector<2x32xf32>
    %35 = vector.extract_strided_slice %7 {offsets = [2, 0], sizes = [2, 128], strides = [1, 1]} : vector<16x128xf32> to vector<2x128xf32>
    %cst_20 = arith.constant dense<0.000000e+00> : vector<2x128xf32>
    %36 = tpu.matmul %34, %0, %cst_20 {dimension_numbers = #tpu.dot_dimension_numbers<[1], [0], [0], [1], [0, 0, 1, 1], [], []>} : vector<2x32xf32>, vector<32x128xf32>, vector<2x128xf32> -> vector<2x128xf32>
    %37 = arith.addf %35, %36 : vector<2x128xf32>
    %38 = vector.extract_strided_slice %37 {offsets = [0, 0], sizes = [2, 96], strides = [1, 1]} : vector<2x128xf32> to vector<2x96xf32>
    %39 = arith.negf %38 : vector<2x96xf32>
    %40 = math.exp %39 : vector<2x96xf32>
    %cst_21 = arith.constant 1.000000e+00 : f32
    %41 = vector.broadcast %cst_21 : f32 to vector<2x96xf32>
    %42 = arith.addf %41, %40 : vector<2x96xf32>
    %43 = arith.divf %41, %42 : vector<2x96xf32>
    %44 = vector.extract_strided_slice %37 {offsets = [0, 96], sizes = [2, 32], strides = [1, 1]} : vector<2x128xf32> to vector<2x32xf32>
    %45 = math.tanh %44 : vector<2x32xf32>
    %46 = vector.extract_strided_slice %43 {offsets = [0, 0], sizes = [2, 32], strides = [1, 1]} : vector<2x96xf32> to vector<2x32xf32>
    %47 = vector.extract_strided_slice %43 {offsets = [0, 32], sizes = [2, 32], strides = [1, 1]} : vector<2x96xf32> to vector<2x32xf32>
    %48 = vector.extract_strided_slice %43 {offsets = [0, 64], sizes = [2, 32], strides = [1, 1]} : vector<2x96xf32> to vector<2x32xf32>
    %49 = arith.mulf %47, %32 : vector<2x32xf32>
    %50 = arith.mulf %46, %45 : vector<2x32xf32>
    %51 = arith.addf %49, %50 : vector<2x32xf32>
    %52 = math.tanh %51 : vector<2x32xf32>
    %53 = arith.mulf %48, %52 : vector<2x32xf32>
    %54 = vector.extract_strided_slice %7 {offsets = [4, 0], sizes = [2, 128], strides = [1, 1]} : vector<16x128xf32> to vector<2x128xf32>
    %cst_22 = arith.constant dense<0.000000e+00> : vector<2x128xf32>
    %55 = tpu.matmul %53, %0, %cst_22 {dimension_numbers = #tpu.dot_dimension_numbers<[1], [0], [0], [1], [0, 0, 1, 1], [], []>} : vector<2x32xf32>, vector<32x128xf32>, vector<2x128xf32> -> vector<2x128xf32>
    %56 = arith.addf %54, %55 : vector<2x128xf32>
    %57 = vector.extract_strided_slice %56 {offsets = [0, 0], sizes = [2, 96], strides = [1, 1]} : vector<2x128xf32> to vector<2x96xf32>
    %58 = arith.negf %57 : vector<2x96xf32>
    %59 = math.exp %58 : vector<2x96xf32>
    %cst_23 = arith.constant 1.000000e+00 : f32
    %60 = vector.broadcast %cst_23 : f32 to vector<2x96xf32>
    %61 = arith.addf %60, %59 : vector<2x96xf32>
    %62 = arith.divf %60, %61 : vector<2x96xf32>
    %63 = vector.extract_strided_slice %56 {offsets = [0, 96], sizes = [2, 32], strides = [1, 1]} : vector<2x128xf32> to vector<2x32xf32>
    %64 = math.tanh %63 : vector<2x32xf32>
    %65 = vector.extract_strided_slice %62 {offsets = [0, 0], sizes = [2, 32], strides = [1, 1]} : vector<2x96xf32> to vector<2x32xf32>
    %66 = vector.extract_strided_slice %62 {offsets = [0, 32], sizes = [2, 32], strides = [1, 1]} : vector<2x96xf32> to vector<2x32xf32>
    %67 = vector.extract_strided_slice %62 {offsets = [0, 64], sizes = [2, 32], strides = [1, 1]} : vector<2x96xf32> to vector<2x32xf32>
    %68 = arith.mulf %66, %51 : vector<2x32xf32>
    %69 = arith.mulf %65, %64 : vector<2x32xf32>
    %70 = arith.addf %68, %69 : vector<2x32xf32>
    %71 = math.tanh %70 : vector<2x32xf32>
    %72 = arith.mulf %67, %71 : vector<2x32xf32>
    %73 = vector.extract_strided_slice %7 {offsets = [6, 0], sizes = [2, 128], strides = [1, 1]} : vector<16x128xf32> to vector<2x128xf32>
    %cst_24 = arith.constant dense<0.000000e+00> : vector<2x128xf32>
    %74 = tpu.matmul %72, %0, %cst_24 {dimension_numbers = #tpu.dot_dimension_numbers<[1], [0], [0], [1], [0, 0, 1, 1], [], []>} : vector<2x32xf32>, vector<32x128xf32>, vector<2x128xf32> -> vector<2x128xf32>
    %75 = arith.addf %73, %74 : vector<2x128xf32>
    %76 = vector.extract_strided_slice %75 {offsets = [0, 0], sizes = [2, 96], strides = [1, 1]} : vector<2x128xf32> to vector<2x96xf32>
    %77 = arith.negf %76 : vector<2x96xf32>
    %78 = math.exp %77 : vector<2x96xf32>
    %cst_25 = arith.constant 1.000000e+00 : f32
    %79 = vector.broadcast %cst_25 : f32 to vector<2x96xf32>
    %80 = arith.addf %79, %78 : vector<2x96xf32>
    %81 = arith.divf %79, %80 : vector<2x96xf32>
    %82 = vector.extract_strided_slice %75 {offsets = [0, 96], sizes = [2, 32], strides = [1, 1]} : vector<2x128xf32> to vector<2x32xf32>
    %83 = math.tanh %82 : vector<2x32xf32>
    %84 = vector.extract_strided_slice %81 {offsets = [0, 0], sizes = [2, 32], strides = [1, 1]} : vector<2x96xf32> to vector<2x32xf32>
    %85 = vector.extract_strided_slice %81 {offsets = [0, 32], sizes = [2, 32], strides = [1, 1]} : vector<2x96xf32> to vector<2x32xf32>
    %86 = vector.extract_strided_slice %81 {offsets = [0, 64], sizes = [2, 32], strides = [1, 1]} : vector<2x96xf32> to vector<2x32xf32>
    %87 = arith.mulf %85, %70 : vector<2x32xf32>
    %88 = arith.mulf %84, %83 : vector<2x32xf32>
    %89 = arith.addf %87, %88 : vector<2x32xf32>
    %90 = math.tanh %89 : vector<2x32xf32>
    %91 = arith.mulf %86, %90 : vector<2x32xf32>
    %92 = vector.extract_strided_slice %7 {offsets = [8, 0], sizes = [2, 128], strides = [1, 1]} : vector<16x128xf32> to vector<2x128xf32>
    %cst_26 = arith.constant dense<0.000000e+00> : vector<2x128xf32>
    %93 = tpu.matmul %91, %0, %cst_26 {dimension_numbers = #tpu.dot_dimension_numbers<[1], [0], [0], [1], [0, 0, 1, 1], [], []>} : vector<2x32xf32>, vector<32x128xf32>, vector<2x128xf32> -> vector<2x128xf32>
    %94 = arith.addf %92, %93 : vector<2x128xf32>
    %95 = vector.extract_strided_slice %94 {offsets = [0, 0], sizes = [2, 96], strides = [1, 1]} : vector<2x128xf32> to vector<2x96xf32>
    %96 = arith.negf %95 : vector<2x96xf32>
    %97 = math.exp %96 : vector<2x96xf32>
    %cst_27 = arith.constant 1.000000e+00 : f32
    %98 = vector.broadcast %cst_27 : f32 to vector<2x96xf32>
    %99 = arith.addf %98, %97 : vector<2x96xf32>
    %100 = arith.divf %98, %99 : vector<2x96xf32>
    %101 = vector.extract_strided_slice %94 {offsets = [0, 96], sizes = [2, 32], strides = [1, 1]} : vector<2x128xf32> to vector<2x32xf32>
    %102 = math.tanh %101 : vector<2x32xf32>
    %103 = vector.extract_strided_slice %100 {offsets = [0, 0], sizes = [2, 32], strides = [1, 1]} : vector<2x96xf32> to vector<2x32xf32>
    %104 = vector.extract_strided_slice %100 {offsets = [0, 32], sizes = [2, 32], strides = [1, 1]} : vector<2x96xf32> to vector<2x32xf32>
    %105 = vector.extract_strided_slice %100 {offsets = [0, 64], sizes = [2, 32], strides = [1, 1]} : vector<2x96xf32> to vector<2x32xf32>
    %106 = arith.mulf %104, %89 : vector<2x32xf32>
    %107 = arith.mulf %103, %102 : vector<2x32xf32>
    %108 = arith.addf %106, %107 : vector<2x32xf32>
    %109 = math.tanh %108 : vector<2x32xf32>
    %110 = arith.mulf %105, %109 : vector<2x32xf32>
    %111 = vector.extract_strided_slice %7 {offsets = [10, 0], sizes = [2, 128], strides = [1, 1]} : vector<16x128xf32> to vector<2x128xf32>
    %cst_28 = arith.constant dense<0.000000e+00> : vector<2x128xf32>
    %112 = tpu.matmul %110, %0, %cst_28 {dimension_numbers = #tpu.dot_dimension_numbers<[1], [0], [0], [1], [0, 0, 1, 1], [], []>} : vector<2x32xf32>, vector<32x128xf32>, vector<2x128xf32> -> vector<2x128xf32>
    %113 = arith.addf %111, %112 : vector<2x128xf32>
    %114 = vector.extract_strided_slice %113 {offsets = [0, 0], sizes = [2, 96], strides = [1, 1]} : vector<2x128xf32> to vector<2x96xf32>
    %115 = arith.negf %114 : vector<2x96xf32>
    %116 = math.exp %115 : vector<2x96xf32>
    %cst_29 = arith.constant 1.000000e+00 : f32
    %117 = vector.broadcast %cst_29 : f32 to vector<2x96xf32>
    %118 = arith.addf %117, %116 : vector<2x96xf32>
    %119 = arith.divf %117, %118 : vector<2x96xf32>
    %120 = vector.extract_strided_slice %113 {offsets = [0, 96], sizes = [2, 32], strides = [1, 1]} : vector<2x128xf32> to vector<2x32xf32>
    %121 = math.tanh %120 : vector<2x32xf32>
    %122 = vector.extract_strided_slice %119 {offsets = [0, 0], sizes = [2, 32], strides = [1, 1]} : vector<2x96xf32> to vector<2x32xf32>
    %123 = vector.extract_strided_slice %119 {offsets = [0, 32], sizes = [2, 32], strides = [1, 1]} : vector<2x96xf32> to vector<2x32xf32>
    %124 = vector.extract_strided_slice %119 {offsets = [0, 64], sizes = [2, 32], strides = [1, 1]} : vector<2x96xf32> to vector<2x32xf32>
    %125 = arith.mulf %123, %108 : vector<2x32xf32>
    %126 = arith.mulf %122, %121 : vector<2x32xf32>
    %127 = arith.addf %125, %126 : vector<2x32xf32>
    %128 = math.tanh %127 : vector<2x32xf32>
    %129 = arith.mulf %124, %128 : vector<2x32xf32>
    %130 = vector.extract_strided_slice %7 {offsets = [12, 0], sizes = [2, 128], strides = [1, 1]} : vector<16x128xf32> to vector<2x128xf32>
    %cst_30 = arith.constant dense<0.000000e+00> : vector<2x128xf32>
    %131 = tpu.matmul %129, %0, %cst_30 {dimension_numbers = #tpu.dot_dimension_numbers<[1], [0], [0], [1], [0, 0, 1, 1], [], []>} : vector<2x32xf32>, vector<32x128xf32>, vector<2x128xf32> -> vector<2x128xf32>
    %132 = arith.addf %130, %131 : vector<2x128xf32>
    %133 = vector.extract_strided_slice %132 {offsets = [0, 0], sizes = [2, 96], strides = [1, 1]} : vector<2x128xf32> to vector<2x96xf32>
    %134 = arith.negf %133 : vector<2x96xf32>
    %135 = math.exp %134 : vector<2x96xf32>
    %cst_31 = arith.constant 1.000000e+00 : f32
    %136 = vector.broadcast %cst_31 : f32 to vector<2x96xf32>
    %137 = arith.addf %136, %135 : vector<2x96xf32>
    %138 = arith.divf %136, %137 : vector<2x96xf32>
    %139 = vector.extract_strided_slice %132 {offsets = [0, 96], sizes = [2, 32], strides = [1, 1]} : vector<2x128xf32> to vector<2x32xf32>
    %140 = math.tanh %139 : vector<2x32xf32>
    %141 = vector.extract_strided_slice %138 {offsets = [0, 0], sizes = [2, 32], strides = [1, 1]} : vector<2x96xf32> to vector<2x32xf32>
    %142 = vector.extract_strided_slice %138 {offsets = [0, 32], sizes = [2, 32], strides = [1, 1]} : vector<2x96xf32> to vector<2x32xf32>
    %143 = vector.extract_strided_slice %138 {offsets = [0, 64], sizes = [2, 32], strides = [1, 1]} : vector<2x96xf32> to vector<2x32xf32>
    %144 = arith.mulf %142, %127 : vector<2x32xf32>
    %145 = arith.mulf %141, %140 : vector<2x32xf32>
    %146 = arith.addf %144, %145 : vector<2x32xf32>
    %147 = math.tanh %146 : vector<2x32xf32>
    %148 = arith.mulf %143, %147 : vector<2x32xf32>
    %149 = vector.extract_strided_slice %7 {offsets = [14, 0], sizes = [2, 128], strides = [1, 1]} : vector<16x128xf32> to vector<2x128xf32>
    %cst_32 = arith.constant dense<0.000000e+00> : vector<2x128xf32>
    %150 = tpu.matmul %148, %0, %cst_32 {dimension_numbers = #tpu.dot_dimension_numbers<[1], [0], [0], [1], [0, 0, 1, 1], [], []>} : vector<2x32xf32>, vector<32x128xf32>, vector<2x128xf32> -> vector<2x128xf32>
    %151 = arith.addf %149, %150 : vector<2x128xf32>
    %152 = vector.extract_strided_slice %151 {offsets = [0, 0], sizes = [2, 96], strides = [1, 1]} : vector<2x128xf32> to vector<2x96xf32>
    %153 = arith.negf %152 : vector<2x96xf32>
    %154 = math.exp %153 : vector<2x96xf32>
    %cst_33 = arith.constant 1.000000e+00 : f32
    %155 = vector.broadcast %cst_33 : f32 to vector<2x96xf32>
    %156 = arith.addf %155, %154 : vector<2x96xf32>
    %157 = arith.divf %155, %156 : vector<2x96xf32>
    %158 = vector.extract_strided_slice %151 {offsets = [0, 96], sizes = [2, 32], strides = [1, 1]} : vector<2x128xf32> to vector<2x32xf32>
    %159 = math.tanh %158 : vector<2x32xf32>
    %160 = vector.extract_strided_slice %157 {offsets = [0, 0], sizes = [2, 32], strides = [1, 1]} : vector<2x96xf32> to vector<2x32xf32>
    %161 = vector.extract_strided_slice %157 {offsets = [0, 32], sizes = [2, 32], strides = [1, 1]} : vector<2x96xf32> to vector<2x32xf32>
    %162 = vector.extract_strided_slice %157 {offsets = [0, 64], sizes = [2, 32], strides = [1, 1]} : vector<2x96xf32> to vector<2x32xf32>
    %163 = arith.mulf %161, %146 : vector<2x32xf32>
    %164 = arith.mulf %160, %159 : vector<2x32xf32>
    %165 = arith.addf %163, %164 : vector<2x32xf32>
    %166 = math.tanh %165 : vector<2x32xf32>
    %167 = arith.mulf %162, %166 : vector<2x32xf32>
    %168 = vector.extract_strided_slice %13 {offsets = [0, 0], sizes = [2, 128], strides = [1, 1]} : vector<8x128xf32> to vector<2x128xf32>
    %cst_34 = arith.constant dense<0.000000e+00> : vector<2x128xf32>
    %169 = tpu.matmul %167, %1, %cst_34 {dimension_numbers = #tpu.dot_dimension_numbers<[1], [0], [0], [1], [0, 0, 1, 1], [], []>} : vector<2x32xf32>, vector<32x128xf32>, vector<2x128xf32> -> vector<2x128xf32>
    %170 = arith.addf %168, %169 : vector<2x128xf32>
    %171 = vector.extract_strided_slice %170 {offsets = [0, 0], sizes = [2, 96], strides = [1, 1]} : vector<2x128xf32> to vector<2x96xf32>
    %172 = arith.negf %171 : vector<2x96xf32>
    %173 = math.exp %172 : vector<2x96xf32>
    %cst_35 = arith.constant 1.000000e+00 : f32
    %174 = vector.broadcast %cst_35 : f32 to vector<2x96xf32>
    %175 = arith.addf %174, %173 : vector<2x96xf32>
    %176 = arith.divf %174, %175 : vector<2x96xf32>
    %177 = vector.extract_strided_slice %170 {offsets = [0, 96], sizes = [2, 32], strides = [1, 1]} : vector<2x128xf32> to vector<2x32xf32>
    %178 = math.tanh %177 : vector<2x32xf32>
    %179 = vector.extract_strided_slice %176 {offsets = [0, 0], sizes = [2, 32], strides = [1, 1]} : vector<2x96xf32> to vector<2x32xf32>
    %180 = vector.extract_strided_slice %176 {offsets = [0, 32], sizes = [2, 32], strides = [1, 1]} : vector<2x96xf32> to vector<2x32xf32>
    %181 = vector.extract_strided_slice %176 {offsets = [0, 64], sizes = [2, 32], strides = [1, 1]} : vector<2x96xf32> to vector<2x32xf32>
    %182 = arith.mulf %180, %165 : vector<2x32xf32>
    %183 = arith.mulf %179, %178 : vector<2x32xf32>
    %184 = arith.addf %182, %183 : vector<2x32xf32>
    %185 = math.tanh %184 : vector<2x32xf32>
    %186 = arith.mulf %181, %185 : vector<2x32xf32>
    %c0_36 = arith.constant 0 : index
    %c0_37 = arith.constant 0 : index
    %187 = vector.load %arg12[%c0_36, %c0_37] : memref<8x32xf32, #tpu.memory_space<vmem>>, vector<2x32xf32>
    tpu.vector_store %arg12[%c0_36, %c0_37], %186 {strides = array<i32>} : memref<8x32xf32, #tpu.memory_space<vmem>>, vector<2x32xf32>,
    %188 = vector.extract_strided_slice %13 {offsets = [2, 0], sizes = [2, 128], strides = [1, 1]} : vector<8x128xf32> to vector<2x128xf32>
    %cst_38 = arith.constant dense<0.000000e+00> : vector<2x128xf32>
    %189 = tpu.matmul %186, %1, %cst_38 {dimension_numbers = #tpu.dot_dimension_numbers<[1], [0], [0], [1], [0, 0, 1, 1], [], []>} : vector<2x32xf32>, vector<32x128xf32>, vector<2x128xf32> -> vector<2x128xf32>
    %190 = arith.addf %188, %189 : vector<2x128xf32>
    %191 = vector.extract_strided_slice %190 {offsets = [0, 0], sizes = [2, 96], strides = [1, 1]} : vector<2x128xf32> to vector<2x96xf32>
    %192 = arith.negf %191 : vector<2x96xf32>
    %193 = math.exp %192 : vector<2x96xf32>
    %cst_39 = arith.constant 1.000000e+00 : f32
    %194 = vector.broadcast %cst_39 : f32 to vector<2x96xf32>
    %195 = arith.addf %194, %193 : vector<2x96xf32>
    %196 = arith.divf %194, %195 : vector<2x96xf32>
    %197 = vector.extract_strided_slice %190 {offsets = [0, 96], sizes = [2, 32], strides = [1, 1]} : vector<2x128xf32> to vector<2x32xf32>
    %198 = math.tanh %197 : vector<2x32xf32>
    %199 = vector.extract_strided_slice %196 {offsets = [0, 0], sizes = [2, 32], strides = [1, 1]} : vector<2x96xf32> to vector<2x32xf32>
    %200 = vector.extract_strided_slice %196 {offsets = [0, 32], sizes = [2, 32], strides = [1, 1]} : vector<2x96xf32> to vector<2x32xf32>
    %201 = vector.extract_strided_slice %196 {offsets = [0, 64], sizes = [2, 32], strides = [1, 1]} : vector<2x96xf32> to vector<2x32xf32>
    %202 = arith.mulf %200, %184 : vector<2x32xf32>
    %203 = arith.mulf %199, %198 : vector<2x32xf32>
    %204 = arith.addf %202, %203 : vector<2x32xf32>
    %205 = math.tanh %204 : vector<2x32xf32>
    %206 = arith.mulf %201, %205 : vector<2x32xf32>
    %c2 = arith.constant 2 : index
    %c0_40 = arith.constant 0 : index
    %207 = vector.load %arg12[%c2, %c0_40] : memref<8x32xf32, #tpu.memory_space<vmem>>, vector<2x32xf32>
    tpu.vector_store %arg12[%c2, %c0_40], %206 {strides = array<i32>} : memref<8x32xf32, #tpu.memory_space<vmem>>, vector<2x32xf32>,
    %208 = vector.extract_strided_slice %13 {offsets = [4, 0], sizes = [2, 128], strides = [1, 1]} : vector<8x128xf32> to vector<2x128xf32>
    %cst_41 = arith.constant dense<0.000000e+00> : vector<2x128xf32>
    %209 = tpu.matmul %206, %1, %cst_41 {dimension_numbers = #tpu.dot_dimension_numbers<[1], [0], [0], [1], [0, 0, 1, 1], [], []>} : vector<2x32xf32>, vector<32x128xf32>, vector<2x128xf32> -> vector<2x128xf32>
    %210 = arith.addf %208, %209 : vector<2x128xf32>
    %211 = vector.extract_strided_slice %210 {offsets = [0, 0], sizes = [2, 96], strides = [1, 1]} : vector<2x128xf32> to vector<2x96xf32>
    %212 = arith.negf %211 : vector<2x96xf32>
    %213 = math.exp %212 : vector<2x96xf32>
    %cst_42 = arith.constant 1.000000e+00 : f32
    %214 = vector.broadcast %cst_42 : f32 to vector<2x96xf32>
    %215 = arith.addf %214, %213 : vector<2x96xf32>
    %216 = arith.divf %214, %215 : vector<2x96xf32>
    %217 = vector.extract_strided_slice %210 {offsets = [0, 96], sizes = [2, 32], strides = [1, 1]} : vector<2x128xf32> to vector<2x32xf32>
    %218 = math.tanh %217 : vector<2x32xf32>
    %219 = vector.extract_strided_slice %216 {offsets = [0, 0], sizes = [2, 32], strides = [1, 1]} : vector<2x96xf32> to vector<2x32xf32>
    %220 = vector.extract_strided_slice %216 {offsets = [0, 32], sizes = [2, 32], strides = [1, 1]} : vector<2x96xf32> to vector<2x32xf32>
    %221 = vector.extract_strided_slice %216 {offsets = [0, 64], sizes = [2, 32], strides = [1, 1]} : vector<2x96xf32> to vector<2x32xf32>
    %222 = arith.mulf %220, %204 : vector<2x32xf32>
    %223 = arith.mulf %219, %218 : vector<2x32xf32>
    %224 = arith.addf %222, %223 : vector<2x32xf32>
    %225 = math.tanh %224 : vector<2x32xf32>
    %226 = arith.mulf %221, %225 : vector<2x32xf32>
    %c4 = arith.constant 4 : index
    %c0_43 = arith.constant 0 : index
    %227 = vector.load %arg12[%c4, %c0_43] : memref<8x32xf32, #tpu.memory_space<vmem>>, vector<2x32xf32>
    tpu.vector_store %arg12[%c4, %c0_43], %226 {strides = array<i32>} : memref<8x32xf32, #tpu.memory_space<vmem>>, vector<2x32xf32>,
    %228 = vector.extract_strided_slice %13 {offsets = [6, 0], sizes = [2, 128], strides = [1, 1]} : vector<8x128xf32> to vector<2x128xf32>
    %cst_44 = arith.constant dense<0.000000e+00> : vector<2x128xf32>
    %229 = tpu.matmul %226, %1, %cst_44 {dimension_numbers = #tpu.dot_dimension_numbers<[1], [0], [0], [1], [0, 0, 1, 1], [], []>} : vector<2x32xf32>, vector<32x128xf32>, vector<2x128xf32> -> vector<2x128xf32>
    %230 = arith.addf %228, %229 : vector<2x128xf32>
    %231 = vector.extract_strided_slice %230 {offsets = [0, 0], sizes = [2, 96], strides = [1, 1]} : vector<2x128xf32> to vector<2x96xf32>
    %232 = arith.negf %231 : vector<2x96xf32>
    %233 = math.exp %232 : vector<2x96xf32>
    %cst_45 = arith.constant 1.000000e+00 : f32
    %234 = vector.broadcast %cst_45 : f32 to vector<2x96xf32>
    %235 = arith.addf %234, %233 : vector<2x96xf32>
    %236 = arith.divf %234, %235 : vector<2x96xf32>
    %237 = vector.extract_strided_slice %230 {offsets = [0, 96], sizes = [2, 32], strides = [1, 1]} : vector<2x128xf32> to vector<2x32xf32>
    %238 = math.tanh %237 : vector<2x32xf32>
    %239 = vector.extract_strided_slice %236 {offsets = [0, 0], sizes = [2, 32], strides = [1, 1]} : vector<2x96xf32> to vector<2x32xf32>
    %240 = vector.extract_strided_slice %236 {offsets = [0, 32], sizes = [2, 32], strides = [1, 1]} : vector<2x96xf32> to vector<2x32xf32>
    %241 = vector.extract_strided_slice %236 {offsets = [0, 64], sizes = [2, 32], strides = [1, 1]} : vector<2x96xf32> to vector<2x32xf32>
    %242 = arith.mulf %240, %224 : vector<2x32xf32>
    %243 = arith.mulf %239, %238 : vector<2x32xf32>
    %244 = arith.addf %242, %243 : vector<2x32xf32>
    %245 = math.tanh %244 : vector<2x32xf32>
    %246 = arith.mulf %241, %245 : vector<2x32xf32>
    %c6 = arith.constant 6 : index
    %c0_46 = arith.constant 0 : index
    %247 = vector.load %arg12[%c6, %c0_46] : memref<8x32xf32, #tpu.memory_space<vmem>>, vector<2x32xf32>
    tpu.vector_store %arg12[%c6, %c0_46], %246 {strides = array<i32>} : memref<8x32xf32, #tpu.memory_space<vmem>>, vector<2x32xf32>,
    %c0_47 = arith.constant 0 : index
    %c0_48 = arith.constant 0 : index
    %248 = vector.load %arg12[%c0_47, %c0_48] : memref<8x32xf32, #tpu.memory_space<vmem>>, vector<8x32xf32>
    %c0_49 = arith.constant 0 : index
    %c0_50 = arith.constant 0 : index
    %249 = vector.load %arg8[%c0_49, %c0_50] : memref<32x64xf32, #tpu.memory_space<vmem>>, vector<32x64xf32>
    %cst_51 = arith.constant dense<0.000000e+00> : vector<8x64xf32>
    %250 = tpu.matmul %248, %249, %cst_51 {dimension_numbers = #tpu.dot_dimension_numbers<[1], [0], [0], [1], [0, 0, 1, 1], [], []>} : vector<8x32xf32>, vector<32x64xf32>, vector<8x64xf32> -> vector<8x64xf32>
    %c0_52 = arith.constant 0 : index
    %c0_53 = arith.constant 0 : index
    %251 = vector.load %arg9[%c0_52, %c0_53] : memref<1x64xf32, #tpu.memory_space<vmem>>, vector<1x64xf32>
    %252 = vector.broadcast %251 : vector<1x64xf32> to vector<8x64xf32>
    %253 = arith.addf %250, %252 : vector<8x64xf32>
    %c0_54 = arith.constant 0 : index
    %c0_55 = arith.constant 0 : index
    %254 = vector.load %arg10[%c0_54, %c0_55] : memref<8x64xf32, #tpu.memory_space<vmem>>, vector<8x64xf32>
    tpu.vector_store %arg10[%c0_54, %c0_55], %253 {strides = array<i32>} : memref<8x64xf32, #tpu.memory_space<vmem>>, vector<8x64xf32>,
    %255 = vector.extract_strided_slice %253 {offsets = [0, 0], sizes = [8, 32], strides = [1, 1]} : vector<8x64xf32> to vector<8x32xf32>
    %256 = vector.extract_strided_slice %253 {offsets = [0, 32], sizes = [8, 32], strides = [1, 1]} : vector<8x64xf32> to vector<8x32xf32>
    %cst_56 = arith.constant 1.000000e+00 : f32
    %257 = vector.broadcast %cst_56 : f32 to vector<8x32xf32>
    %258 = arith.addf %257, %256 : vector<8x32xf32>
    %259 = arith.mulf %255, %255 : vector<8x32xf32>
    %260 = arith.subf %258, %259 : vector<8x32xf32>
    %261 = math.exp %256 : vector<8x32xf32>
    %262 = arith.subf %260, %261 : vector<8x32xf32>
    %263 = vector.shape_cast %262 : vector<8x32xf32> to vector<1x8x32xf32>
    %cst_57 = arith.constant dense<0.000000e+00> : vector<1xf32>
    %264 = vector.multi_reduction <add>, %263, %cst_57 [1, 2] : vector<1x8x32xf32> to vector<1xf32>
    %265 = vector.shape_cast %264 : vector<1xf32> to vector<1x1x1xf32>
    %266 = vector.extract %265[0, 0, 0] : f32 from vector<1x1x1xf32>
    %cst_58 = arith.constant -5.000000e-01 : f32
    %267 = arith.mulf %cst_58, %266 : f32
    %cst_59 = arith.constant 2.560000e+02 : f32
    %268 = arith.divf %267, %cst_59 : f32
    %269 = vector.broadcast %268 : f32 to vector<1x1xf32>
    %c0_60 = arith.constant 0 : index
    %c0_61 = arith.constant 0 : index
    %270 = vector.load %arg11[%c0_60, %c0_61] : memref<1x1xf32, #tpu.memory_space<vmem>>, vector<1x1xf32>
    tpu.vector_store %arg11[%c0_60, %c0_61], %269 {strides = array<i32>} : memref<1x1xf32, #tpu.memory_space<vmem>>, vector<1x1xf32>,
    return
  }
}

</mosaic_0001>

<bundles_post_ra>
// kernel: tpu_custom_call.1
= control target key start
LH: loop header
LB: loop body
LE: loop exit
PB: predicated region body
PF: predicated region fallthrough
CT: control target
= control target key end

     0   :  { %17 = vsyncpa [#allocation4], 0  ;;  %s2822_s0 = inlined_call_operand.hbm [shape: f32[16,32], index: 0, kind: input, shape index: {}]   ;;  %s2823_s1 = inlined_call_operand.hbm [shape: f32[8,32], index: 1, kind: input, shape index: {}]   ;;  %s2824_s2 = inlined_call_operand.hbm [shape: f32[32,128], index: 2, kind: input, shape index: {}]   ;;  %s2825_s3 = inlined_call_operand.hbm [shape: f32[32,128], index: 3, kind: input, shape index: {}]   ;;  %s2826_s4 = inlined_call_operand.vmem [shape: f32[1,128], index: 4, kind: input, shape index: {}]   ;;  %s2827_s5 = inlined_call_operand.hbm [shape: f32[32,128], index: 5, kind: input, shape index: {}]   ;;  %s2828_s6 = inlined_call_operand.hbm [shape: f32[32,128], index: 6, kind: input, shape index: {}]   ;;  %s2829_s7 = inlined_call_operand.vmem [shape: f32[1,128], index: 7, kind: input, shape index: {}]   ;;  %s2830_s8 = inlined_call_operand.hbm [shape: f32[32,64], index: 8, kind: input, shape index: {}]   ;;  %s2831_s9 = inlined_call_operand.vmem [shape: f32[1,64], index: 9, kind: input, shape index: {}]   ;;  %s2832_s10 = inlined_call_operand.hbm [shape: f32[8,64], index: 10, kind: output, shape index: {0}]   ;;  %s2833_s11 = inlined_call_operand.hbm [shape: f32[1,1], index: 11, kind: output, shape index: {1}]  }
   0x1   :  { %18 = vsyncpa [#allocation7], 0 }
   0x2   :  { %19 = vsyncpa [#allocation10], 0 }
   0x3   :  { %20 = vsyncpa [#allocation13], 0 }
   0x4   :  { %21 = vsyncpa [#allocation5], 0 }
   0x5   :  { %22 = vsyncpa [#allocation17], 0  ;;  %s2445_s17 = smov [#allocation6]   ;;  %s2235_s21 = scalar_lea.hbm %s2823_s1, 128 }
   0x6   :  { %s41_s18 = sshll.u32 %s2445_s17, 4  ;;  %p2236_p0 = scmp.ne.s32.totalorder %s2823_s1, %s2235_s21  ;;  %s42_s18 = int_to_ptr.vmem [resolvable:$true] %s41_s18 }
   0x7   :  { %p2239_p1 = scmp.lt.u32.totalorder %s2235_s21, %s2823_s1 }
   0x9   :  { %p2241_p2 = pnand %p2239_p1, %p2236_p0 }
   0xb   :  { %2244 = shalt.err (!%p2241_p2)
}
   0xc   :  { %s2245_s26 = scalar_lea.vmem %s42_s18, 128  ;;  %p2250_p4 = scmp.lt.s32.totalorder %s42_s18, %s42_s18 }
   0xd   :  { %p2246_p3 = scmp.ne.s32.totalorder %s42_s18, %s2245_s26  ;;  %p2251_p5 = scmp.lt.s32.totalorder %s2245_s26, %s2245_s26 }
   0xf   :  { %p2252_p6 = por %p2251_p5, %p2250_p4 }
  0x11   :  { %p2253_p7 = pnand %p2252_p6, %p2246_p3 }
  0x13   :  { %2256 = shalt.err (!%p2253_p7)
}
  0x14   :  { %44 = dma.hbm_to_vmem [thread:$0]  %s2823_s1, 128, %s42_s18, [#allocation7]  }
  0x15   :  { %s2446_s29 = smov [#allocation9]   ;;  %s2447_s12 = smov [#allocation12]  }
  0x16   :  { %s62_s30 = sshll.u32 %s2446_s29, 4  ;;  %s88_s13 = sshll.u32 %s2447_s12, 4  ;;  %s63_s30 = int_to_ptr.vmem [resolvable:$true] %s62_s30  ;;  %s89_s13 = int_to_ptr.vmem [resolvable:$true] %s88_s13 }
  0x17   :  { %s2257_s16 = scalar_lea.hbm %s2825_s3, 512 }
  0x18   :  { %p2258_p8 = scmp.ne.s32.totalorder %s2825_s3, %s2257_s16  ;;  %p2261_p9 = scmp.lt.u32.totalorder %s2257_s16, %s2825_s3 }
  0x1a   :  { %p2263_p10 = pnand %p2261_p9, %p2258_p8 }
  0x1c   :  { %2266 = shalt.err (!%p2263_p10)
}
  0x1d   :  { %s2267_s1 = scalar_lea.vmem %s63_s30, 512  ;;  %p2272_p12 = scmp.lt.s32.totalorder %s63_s30, %s63_s30 }
  0x1e   :  { %p2268_p11 = scmp.ne.s32.totalorder %s63_s30, %s2267_s1  ;;  %p2273_p13 = scmp.lt.s32.totalorder %s2267_s1, %s2267_s1 }
  0x20   :  { %p2274_p0 = por %p2273_p13, %p2272_p12 }
  0x22   :  { %p2275_p1 = pnand %p2274_p0, %p2268_p11 }
  0x24   :  { %2278 = shalt.err (!%p2275_p1)
}
  0x25   :  { %s2448_s18 = smov 128   ;;  %s2449_s22 = smov 8  }
  0x26   :  { %68 = dma.hbm_to_vmem [thread:$0]  %s2825_s3, 512, %s63_s30, [#allocation10], %s2448_s18, %s2448_s18, %s2449_s22  }
  0x27   :  { %s2279_s27 = scalar_lea.hbm %s2828_s6, 512 }
  0x28   :  { %p2280_p2 = scmp.ne.s32.totalorder %s2828_s6, %s2279_s27  ;;  %p2283_p3 = scmp.lt.u32.totalorder %s2279_s27, %s2828_s6 }
  0x2a   :  { %p2285_p4 = pnand %p2283_p3, %p2280_p2 }
  0x2c   :  { %2288 = shalt.err (!%p2285_p4)
}
  0x2d   :  { %s2289_s15 = scalar_lea.vmem %s89_s13, 512  ;;  %p2294_p6 = scmp.lt.s32.totalorder %s89_s13, %s89_s13 }
  0x2e   :  { %p2290_p5 = scmp.ne.s32.totalorder %s89_s13, %s2289_s15  ;;  %p2295_p7 = scmp.lt.s32.totalorder %s2289_s15, %s2289_s15 }
  0x30   :  { %p2296_p8 = por %p2295_p7, %p2294_p6 }
  0x32   :  { %p2297_p9 = pnand %p2296_p8, %p2290_p5 }
  0x34   :  { %2300 = shalt.err (!%p2297_p9)
}
  0x35   :  { %94 = dma.hbm_to_vmem [thread:$0]  %s2828_s6, 512, %s89_s13, [#allocation13], %s2448_s18, %s2448_s18, %s2449_s22  }
  0x36   :  { %s2450_s16 = smov [#allocation3]   ;;  %s2451_s19 = smov [#allocation8]  }
  0x37   :  { %s28_s17 = sshll.u32 %s2450_s16, 4  ;;  %s50_s20 = sshll.u32 %s2451_s19, 4  ;;  %s29_s17 = int_to_ptr.vmem [resolvable:$true] %s28_s17  ;;  %s51_s20 = int_to_ptr.vmem [resolvable:$true] %s50_s20 }
  0x38   :  { %s2301_s23 = scalar_lea.hbm %s2822_s0, 256 }
  0x39   :  { %p2302_p10 = scmp.ne.s32.totalorder %s2822_s0, %s2301_s23  ;;  %p2305_p11 = scmp.lt.u32.totalorder %s2301_s23, %s2822_s0 }
  0x3b   :  { %p2307_p12 = pnand %p2305_p11, %p2302_p10 }
  0x3d   :  { %2310 = shalt.err (!%p2307_p12)
}
  0x3e   :  { %s2311_s6 = scalar_lea.vmem %s29_s17, 256  ;;  %p2316_p0 = scmp.lt.s32.totalorder %s29_s17, %s29_s17 }
  0x3f   :  { %p2312_p13 = scmp.ne.s32.totalorder %s29_s17, %s2311_s6  ;;  %p2317_p1 = scmp.lt.s32.totalorder %s2311_s6, %s2311_s6 }
  0x41   :  { %p2318_p2 = por %p2317_p1, %p2316_p0 }
  0x43   :  { %p2319_p3 = pnand %p2318_p2, %p2312_p13 }
  0x45   :  { %2322 = shalt.err (!%p2319_p3)
}
  0x46   :  { %34 = dma.hbm_to_vmem [thread:$0]  %s2822_s0, 256, %s29_s17, [#allocation4], %s2448_s18, %s2448_s18, %s2449_s22  }
  0x47   :  { %s2323_s14 = scalar_lea.hbm %s2824_s2, 512 }
  0x48   :  { %p2324_p4 = scmp.ne.s32.totalorder %s2824_s2, %s2323_s14  ;;  %p2327_p5 = scmp.lt.u32.totalorder %s2323_s14, %s2824_s2 }
  0x4a   :  { %p2329_p6 = pnand %p2327_p5, %p2324_p4 }
  0x4c   :  { %2332 = shalt.err (!%p2329_p6)
}
  0x4d   :  { %s2333_s19 = scalar_lea.vmem %s51_s20, 512  ;;  %p2338_p8 = scmp.lt.s32.totalorder %s51_s20, %s51_s20 }
  0x4e   :  { %p2334_p7 = scmp.ne.s32.totalorder %s51_s20, %s2333_s19  ;;  %p2339_p9 = scmp.lt.s32.totalorder %s2333_s19, %s2333_s19 }
  0x50   :  { %p2340_p10 = por %p2339_p9, %p2338_p8 }
  0x52   :  { %p2341_p11 = pnand %p2340_p10, %p2334_p7 }
  0x54   :  { %2344 = shalt.err (!%p2341_p11)
}
  0x55   :  { %56 = dma.hbm_to_vmem [thread:$0]  %s2824_s2, 512, %s51_s20, [#allocation7], %s2448_s18, %s2448_s18, %s2449_s22  }
  0x56   :  { %s2452_s21 = smov [#allocation11]   ;;  %s2453_s23 = smov [#allocation14]  }
  0x57   :  { %s76_s1 = sshll.u32 %s2452_s21, 4  ;;  %s102_s24 = sshll.u32 %s2453_s23, 4  ;;  %s77_s1 = int_to_ptr.vmem [resolvable:$true] %s76_s1  ;;  %s103_s24 = int_to_ptr.vmem [resolvable:$true] %s102_s24 }
  0x58   :  { %s2345_s27 = scalar_lea.hbm %s2827_s5, 512 }
  0x59   :  { %p2346_p12 = scmp.ne.s32.totalorder %s2827_s5, %s2345_s27  ;;  %p2349_p13 = scmp.lt.u32.totalorder %s2345_s27, %s2827_s5 }
  0x5b   :  { %p2351_p0 = pnand %p2349_p13, %p2346_p12 }
  0x5d   :  { %2354 = shalt.err (!%p2351_p0)
}
  0x5e   :  { %s2355_s2 = scalar_lea.vmem %s77_s1, 512  ;;  %p2360_p2 = scmp.lt.s32.totalorder %s77_s1, %s77_s1 }
  0x5f   :  { %p2356_p1 = scmp.ne.s32.totalorder %s77_s1, %s2355_s2  ;;  %p2361_p3 = scmp.lt.s32.totalorder %s2355_s2, %s2355_s2 }
  0x61   :  { %p2362_p4 = por %p2361_p3, %p2360_p2 }
  0x63   :  { %p2363_p5 = pnand %p2362_p4, %p2356_p1 }
  0x65   :  { %2366 = shalt.err (!%p2363_p5)
}
  0x66   :  { %82 = dma.hbm_to_vmem [thread:$0]  %s2827_s5, 512, %s77_s1, [#allocation10], %s2448_s18, %s2448_s18, %s2449_s22  }
  0x67   :  { %s2367_s3 = scalar_lea.hbm %s2830_s8, 512 }
  0x68   :  { %p2368_p6 = scmp.ne.s32.totalorder %s2830_s8, %s2367_s3  ;;  %p2371_p7 = scmp.lt.u32.totalorder %s2367_s3, %s2830_s8 }
  0x6a   :  { %p2373_p8 = pnand %p2371_p7, %p2368_p6 }
  0x6c   :  { %2376 = shalt.err (!%p2373_p8)
}
  0x6d   :  { %s2377_s17 = scalar_lea.vmem %s103_s24, 512  ;;  %p2382_p10 = scmp.lt.s32.totalorder %s103_s24, %s103_s24 }
  0x6e   :  { %p2378_p9 = scmp.ne.s32.totalorder %s103_s24, %s2377_s17  ;;  %p2383_p11 = scmp.lt.s32.totalorder %s2377_s17, %s2377_s17 }
  0x70   :  { %p2384_p12 = por %p2383_p11, %p2382_p10 }
  0x72   :  { %p2385_p13 = pnand %p2384_p12, %p2378_p9 }
  0x74   :  { %2388 = shalt.err (!%p2385_p13)
}
  0x75   :  { %108 = dma.hbm_to_vmem [thread:$0]  %s2830_s8, 512, %s103_s24, [#allocation13], %s2448_s18, %s2448_s18, %s2449_s22  }
  0x76   :  { %2433 = dma.done.wait [#allocation4], 256  }
  0x77   :  { %2434 = vsyncadd [#allocation4], 4294967040 }
  0x78   :  { %2435 = dma.done.wait [#allocation7], 640  }
  0x79   :  { %2436 = vsyncadd [#allocation7], 4294966656 }
  0x7a   :  { %2437 = dma.done.wait [#allocation10], 1024  }
  0x7b   :  { %2438 = vsyncadd [#allocation10], 4294966272 }
  0x7c   :  { %2439 = dma.done.wait [#allocation13], 1024  }
  0x7d   :  { %2440 = vsyncadd [#allocation13], 4294966272  ;;  %v2454_v0 = vmov 0.0|0.0   ;;  %vm2455_vm0 = vmmov 0   ;;  %v2456_v1 = vmov 0.0   ;;  %vm153_vm1 = vcmask 261120  }
  0x7e   :  { %2034 = vmatprep.subr.bf16.mxu1 %v2454_v0  ;;  %1880 = vmatprep.mubr.msk.f32.mxu1 %vm2455_vm0, %v2456_v1  ;;  %v142_v2 = vld [vmem:[#allocation8] sm:$0xff]  ;;  %v143_v3 = vld [vmem:[#allocation8 + $0x8] sm:$0xff]  ;;  %v144_v4 = vld [vmem:[#allocation8 + $0x10] sm:$0xff]  ;;  %s2457_s22 = smov 32   ;;  %vm1270_vm2 = vcmask 254976   ;;  %vm1379_vm3 = vcmask 257026  }
  0x7f   :  { %v2026_v5 = vpack.c.bf16 %v143_v3, %v142_v2  ;;  %v145_v6 = vld [vmem:[#allocation8 + $0x18] sm:$0xff]  ;;  %v140_v7 = vld [vmem:[#allocation3] sm:$0xff]  ;;  %v132_v9 = vld [vmem:[#allocation9] sm:$0xff]  ;;  %vm1491_vm4 = vcmask 259076   ;;  %vm1603_vm5 = vcmask 261126   ;;  %vm1690_vm6 = vcmask 523264  }
  0x80   :  { %v2030_v8 = vpack.c.bf16 %v145_v6, %v144_v4  ;;  %1869 = vmatprep.mubr.msk.f32.mxu0 %vm153_vm1, %v140_v7  ;;  %v133_v10 = vld [vmem:[#allocation9 + $0x8] sm:$0xff]  ;;  %v141_v11 = vld [vmem:[#allocation3 + $0x8] sm:$0xff]  ;;  %v135_v14 = vld [vmem:[#allocation9 + $0x18] sm:$0xff]  ;;  %s2459_s25 = smov 96  }
  0x81   :  { %2027 = vmatprep.subr.bf16.mxu0 %v2026_v5  ;;  %v2628_v12 = vpack.c.bf16 %v133_v10, %v132_v9  ;;  %v134_v13 = vld [vmem:[#allocation9 + $0x10] sm:$0xff]  ;;  %v1755_v16 = vld [vmem:[%s2826_s4] ss:$0 sm:$0xff]  ;;  %v237_v35 = vld [vmem:[#allocation11 + $0x8] sm:$0xff]  ;;  %s2458_s4 = smov 64  }
  0x82   :  { %2029 = vmatpush3.bf16.msra.mxu0 %v2026_v5  ;;  %v2633_v15 = vpack.c.bf16 %v135_v14, %v134_v13  ;;  %v236_v34 = vld [vmem:[#allocation11] sm:$0xff]  ;;  %v238_v36 = vld [vmem:[#allocation11 + $0x10] sm:$0xff]  ;;  %v239_v38 = vld [vmem:[#allocation11 + $0x18] sm:$0xff] }
  0x83   :  { %2031 = vmatprep.subr.bf16.mxu0 %v2030_v8  ;;  %v2035_v37 = vpack.c.bf16 %v237_v35, %v236_v34  ;;  %v2038_v39 = vpack.c.bf16 %v239_v38, %v238_v36  ;;  %v235_v40 = vld [vmem:[#allocation6] sm:$0xff] }
  0x85   :  { %2036 = vmatpush3.bf16.msra.mxu1 %v2035_v37 }
  0x86   :  { %2033 = vmatpush3.bf16.msra.mxu0 %v2030_v8  ;;  %2037 = vmatprep.subr.bf16.mxu1 %v2454_v0 }
  0x87   :  { %2040 = vmatprep.subr.bf16.mxu0 %v2454_v0 }
  0x89   :  { %1870 = vmatmul.mubr.msk.f32.vlgmr.msra.gmra.mrb[0].mxu0 %vm153_vm1, %v141_v11  ;;  %2039 = vmatpush3.bf16.msra.mxu1 %v2038_v39 }
  0x8a   :  { %2042 = vmatpush3.bf16.msra.mxu0 %v2628_v12  ;;  %1891 = vmatprep.mubr.msk.f32.mxu0 %vm2455_vm0, %v2456_v1 }
  0x8b   :  { %2043 = vmatprep.subr.bf16.mxu0 %v2454_v0  ;;  %2046 = vmatprep.subr.bf16.mxu1 %v2454_v0 }
  0x8c   :  { %1881 = vmatmul.mubr.msk.f32.vlgmr.msra.gmra.mrb[0].mxu1 %vm153_vm1, %v235_v40 }
  0x8d   :  { %2048 = vmatpush3.bf16.msra.mxu1 %v2628_v12  ;;  %1902 = vmatprep.mubr.msk.f32.mxu1 %vm2455_vm0, %v2456_v1 }
  0x8e   :  { %2045 = vmatpush3.bf16.msra.mxu0 %v2633_v15  ;;  %2049 = vmatprep.subr.bf16.mxu1 %v2454_v0 }
  0x8f   :  { %2052 = vmatprep.subr.bf16.mxu0 %v2454_v0 }
  0x91   :  { %1892 = vmatmul.mubr.f32.vlgmr.msra.gmra.mrb[2].mxu0 %v2456_v1  ;;  %2051 = vmatpush3.bf16.msra.mxu1 %v2633_v15 }
  0x92   :  { %2054 = vmatpush3.bf16.msra.mxu0 %v2628_v12  ;;  %1913 = vmatprep.mubr.msk.f32.mxu0 %vm2455_vm0, %v2456_v1 }
  0x93   :  { %2055 = vmatprep.subr.bf16.mxu0 %v2454_v0  ;;  %2058 = vmatprep.subr.bf16.mxu1 %v2454_v0 }
  0x96   :  { %2057 = vmatpush3.bf16.msra.mxu0 %v2633_v15 }
  0x97   :  { %2064 = vmatprep.subr.bf16.mxu0 %v2454_v0 }
 0x15c   :  { %v1871_v17 = vpop.f32.mrb[0].mxu0 }
 0x15d   :  { %v2650_v18 = vadd.f32 %v1871_v17, %v1755_v16  ;;  %v226_v19 = vpop.f32.mrb[1].mxu0 }
 0x15e   :  { %v2652_v20 = vadd.f32 %v1755_v16, %v226_v19 }
 0x15f   :  { %v2668_v44 = vpop.f32.mrb[0].mxu1 }
 0x160   :  { %v1882_v45 = vpop.f32.mrb[1].mxu1 }
 0x164   :  { %v389_v21 = vpop.f32.mrb[2].mxu0 }
 0x165   :  { %v393_v22 = vadd.f32 %v389_v21, %v2652_v20  ;;  %v1893_v23 = vpop.f32.mrb[3].mxu0 }
 0x167   :  { %2137 = vtanh.f32 %v393_v22  ;;  %v1760_v25 = vmul.f32 -1.442695, %v393_v22 }
 0x169   :  { %2139 = vpow2.f32 %v1760_v25 }
 0x171   :  { %v2138_v24 = vpop.eup %2137 }
 0x172   :  { %403 = vrot.lane.b32.xlu0 %v2138_v24, %s2457_s22 }
 0x173   :  { %v2140_v26 = vpop.eup %2139 }
 0x174   :  { %v397_v27 = vadd.f32 1.0, %v2140_v26 }
 0x176   :  { %2141 = vrcp.f32 %v397_v27 }
 0x180   :  { %v2142_v28 = vpop.eup %2141 }
 0x181   :  { %v401_v31 = vmul.f32 0.0, %v2142_v28 }
 0x1e4   :  { %v404_v29 = vpop.permute.xlu0 %403 }
 0x1e5   :  { %v406_v30 = vmul.f32 %v2142_v28, %v404_v29 }
 0x1e7   :  { %408 = vrot.lane.b32.xlu0 %v406_v30, %s2457_s22 }
 0x259   :  { %v409_v32 = vpop.permute.xlu0 %408 }
 0x25a   :  { %v411_v33 = vadd.f32 %v409_v32, %v401_v31 }
 0x25c   :  { %2143 = vtanh.f32 %v411_v33  ;;  %v505_v58 = vrot.slane %v411_v33, 6 }
 0x266   :  { %v2144_v41 = vpop.eup %2143 }
 0x267   :  { %414 = vrot.lane.b32.xlu1 %v2144_v41, %s2457_s22 }
 0x2d9   :  { %v415_v42 = vpop.permute.xlu1 %414 }
 0x2da   :  { %v417_v43 = vmul.f32 %v2142_v28, %v415_v42 }
 0x2dc   :  { %419 = vrot.lane.b32.xlu1 %v417_v43, %s2458_s4 }
 0x34e   :  { %v420_v46 = vpop.permute.xlu1 %419 }
 0x34f   :  { %1903 = vmatmul.mubr.msk.f32.vlgmr.msra.gmra.mrb[2].mxu1 %vm153_vm1, %v420_v46 }
 0x350   :  { %2060 = vmatpush3.bf16.msra.mxu1 %v2628_v12  ;;  %1924 = vmatprep.mubr.msk.f32.mxu1 %vm2455_vm0, %v2456_v1 }
 0x351   :  { %2061 = vmatprep.subr.bf16.mxu1 %v2454_v0 }
 0x354   :  { %2063 = vmatpush3.bf16.msra.mxu1 %v2633_v15 }
 0x355   :  { %2070 = vmatprep.subr.bf16.mxu1 %v2454_v0 }
 0x422   :  { %v489_v47 = vpop.f32.mrb[2].mxu1 }
 0x423   :  { %v494_v48 = vrot.slane %v489_v47, 6  ;;  %v1904_v49 = vpop.f32.mrb[3].mxu1 }
 0x425   :  { %v496_v50 = vadd.f32 %v494_v48, %v2652_v20 }
 0x427   :  { %2145 = vtanh.f32 %v496_v50  ;;  %v1762_v52 = vmul.f32 -1.442695, %v496_v50 }
 0x429   :  { %2147 = vpow2.f32 %v1762_v52 }
 0x431   :  { %v2146_v51 = vpop.eup %2145 }
 0x432   :  { %509 = vrot.lane.b32.xlu0 %v2146_v51, %s2457_s22 }
 0x433   :  { %v2148_v53 = vpop.eup %2147 }
 0x434   :  { %v500_v54 = vadd.f32 1.0, %v2148_v53 }
 0x436   :  { %2149 = vrcp.f32 %v500_v54 }
 0x440   :  { %v2150_v55 = vpop.eup %2149 }
 0x441   :  { %v507_v59 = vmul.f32 %v2150_v55, %v505_v58 }
 0x4a4   :  { %v510_v56 = vpop.permute.xlu0 %509 }
 0x4a5   :  { %v512_v57 = vmul.f32 %v2150_v55, %v510_v56 }
 0x4a7   :  { %514 = vrot.lane.b32.xlu1 %v512_v57, %s2457_s22 }
 0x519   :  { %v515_v60 = vpop.permute.xlu1 %514 }
 0x51a   :  { %v517_v61 = vadd.f32 %v515_v60, %v507_v59 }
 0x51c   :  { %2151 = vtanh.f32 %v517_v61  ;;  %v612_v19 = vrot.slane %v517_v61, 6 }
 0x526   :  { %v2152_v62 = vpop.eup %2151 }
 0x527   :  { %520 = vrot.lane.b32.xlu0 %v2152_v62, %s2457_s22 }
 0x599   :  { %v521_v63 = vpop.permute.xlu0 %520 }
 0x59a   :  { %v523_v2 = vmul.f32 %v2150_v55, %v521_v63 }
 0x59c   :  { %v525_v3 = vrot.slane %v523_v2, 2 }
 0x59e   :  { %526 = vrot.lane.b32.xlu1 %v525_v3, %s2458_s4 }
 0x610   :  { %v527_v4 = vpop.permute.xlu1 %526 }
 0x611   :  { %1914 = vmatmul.mubr.msk.f32.vlgmr.msra.gmra.mrb[4].mxu0 %vm153_vm1, %v527_v4 }
 0x612   :  { %2066 = vmatpush3.bf16.msra.mxu0 %v2628_v12  ;;  %1935 = vmatprep.mubr.msk.f32.mxu0 %vm2455_vm0, %v2456_v1 }
 0x613   :  { %2067 = vmatprep.subr.bf16.mxu0 %v2454_v0 }
 0x616   :  { %2069 = vmatpush3.bf16.msra.mxu0 %v2633_v15 }
 0x617   :  { %2076 = vmatprep.subr.bf16.mxu0 %v2454_v0 }
 0x6e4   :  { %v596_v5 = vpop.f32.mrb[4].mxu0 }
 0x6e5   :  { %v601_v6 = vrot.slane %v596_v5, 4  ;;  %v1915_v7 = vpop.f32.mrb[5].mxu0 }
 0x6e7   :  { %v603_v8 = vadd.f32 %v601_v6, %v2652_v20 }
 0x6e9   :  { %2153 = vtanh.f32 %v603_v8  ;;  %v1764_v10 = vmul.f32 -1.442695, %v603_v8 }
 0x6eb   :  { %2155 = vpow2.f32 %v1764_v10 }
 0x6f3   :  { %v2154_v9 = vpop.eup %2153 }
 0x6f4   :  { %616 = vrot.lane.b32.xlu0 %v2154_v9, %s2457_s22 }
 0x6f5   :  { %v2156_v11 = vpop.eup %2155 }
 0x6f6   :  { %v607_v13 = vadd.f32 1.0, %v2156_v11 }
 0x6f8   :  { %2157 = vrcp.f32 %v607_v13 }
 0x702   :  { %v2158_v14 = vpop.eup %2157 }
 0x703   :  { %v614_v21 = vmul.f32 %v2158_v14, %v612_v19 }
 0x766   :  { %v617_v16 = vpop.permute.xlu0 %616 }
 0x767   :  { %v619_v17 = vmul.f32 %v2158_v14, %v617_v16 }
 0x769   :  { %621 = vrot.lane.b32.xlu1 %v619_v17, %s2457_s22 }
 0x7db   :  { %v622_v22 = vpop.permute.xlu1 %621 }
 0x7dc   :  { %v624_v23 = vadd.f32 %v622_v22, %v614_v21 }
 0x7de   :  { %2159 = vtanh.f32 %v624_v23  ;;  %v719_v40 = vrot.slane %v624_v23, 6 }
 0x7e8   :  { %v2160_v24 = vpop.eup %2159 }
 0x7e9   :  { %627 = vrot.lane.b32.xlu0 %v2160_v24, %s2457_s22 }
 0x85b   :  { %v628_v25 = vpop.permute.xlu0 %627 }
 0x85c   :  { %v630_v26 = vmul.f32 %v2158_v14, %v628_v25 }
 0x85e   :  { %v632_v27 = vrot.slane %v630_v26, 4 }
 0x860   :  { %633 = vrot.lane.b32.xlu1 %v632_v27, %s2458_s4 }
 0x8d2   :  { %v634_v28 = vpop.permute.xlu1 %633 }
 0x8d3   :  { %1925 = vmatmul.mubr.msk.f32.vlgmr.msra.gmra.mrb[4].mxu1 %vm153_vm1, %v634_v28 }
 0x8d4   :  { %2072 = vmatpush3.bf16.msra.mxu1 %v2628_v12  ;;  %1946 = vmatprep.mubr.msk.f32.mxu1 %vm2455_vm0, %v2456_v1 }
 0x8d5   :  { %2073 = vmatprep.subr.bf16.mxu1 %v2454_v0 }
 0x8d8   :  { %2075 = vmatpush3.bf16.msra.mxu1 %v2633_v15 }
 0x8d9   :  { %2082 = vmatprep.subr.bf16.mxu1 %v2454_v0 }
 0x9a6   :  { %v703_v29 = vpop.f32.mrb[4].mxu1 }
 0x9a7   :  { %v708_v30 = vrot.slane %v703_v29, 2  ;;  %v1926_v31 = vpop.f32.mrb[5].mxu1 }
 0x9a9   :  { %v710_v32 = vadd.f32 %v708_v30, %v2652_v20 }
 0x9ab   :  { %2161 = vtanh.f32 %v710_v32  ;;  %v1766_v34 = vmul.f32 -1.442695, %v710_v32 }
 0x9ad   :  { %2163 = vpow2.f32 %v1766_v34 }
 0x9b5   :  { %v2162_v33 = vpop.eup %2161 }
 0x9b6   :  { %723 = vrot.lane.b32.xlu0 %v2162_v33, %s2457_s22 }
 0x9b7   :  { %v2164_v35 = vpop.eup %2163 }
 0x9b8   :  { %v714_v36 = vadd.f32 1.0, %v2164_v35 }
 0x9ba   :  { %2165 = vrcp.f32 %v714_v36 }
 0x9c4   :  { %v2166_v37 = vpop.eup %2165 }
 0x9c5   :  { %v721_v41 = vmul.f32 %v2166_v37, %v719_v40 }
 0xa28   :  { %v724_v38 = vpop.permute.xlu0 %723 }
 0xa29   :  { %v726_v39 = vmul.f32 %v2166_v37, %v724_v38 }
 0xa2b   :  { %728 = vrot.lane.b32.xlu1 %v726_v39, %s2457_s22 }
 0xa9d   :  { %v729_v42 = vpop.permute.xlu1 %728 }
 0xa9e   :  { %v731_v43 = vadd.f32 %v729_v42, %v721_v41 }
 0xaa0   :  { %2167 = vtanh.f32 %v731_v43  ;;  %v823_v59 = vrot.slane %v731_v43, 6 }
 0xaaa   :  { %v2168_v20 = vpop.eup %2167 }
 0xaab   :  { %734 = vrot.lane.b32.xlu0 %v2168_v20, %s2457_s22 }
 0xb1d   :  { %v735_v45 = vpop.permute.xlu0 %734 }
 0xb1e   :  { %v737_v46 = vmul.f32 %v2166_v37, %v735_v45 }
 0xb20   :  { %v739_v47 = vrot.slane %v737_v46, 6 }
 0xb22   :  { %740 = vrot.lane.b32.xlu1 %v739_v47, %s2458_s4 }
 0xb94   :  { %v741_v48 = vpop.permute.xlu1 %740 }
 0xb95   :  { %1936 = vmatmul.mubr.msk.f32.vlgmr.msra.gmra.mrb[6].mxu0 %vm153_vm1, %v741_v48 }
 0xb96   :  { %2078 = vmatpush3.bf16.msra.mxu0 %v2628_v12  ;;  %1957 = vmatprep.mubr.msk.f32.mxu0 %vm2455_vm0, %v2456_v1 }
 0xb97   :  { %2079 = vmatprep.subr.bf16.mxu0 %v2454_v0 }
 0xb9a   :  { %2081 = vmatpush3.bf16.msra.mxu0 %v2633_v15 }
 0xb9b   :  { %2088 = vmatprep.subr.bf16.mxu0 %v2454_v0 }
 0xc68   :  { %v810_v49 = vpop.f32.mrb[6].mxu0 }
 0xc69   :  { %v814_v50 = vadd.f32 %v810_v49, %v2650_v18  ;;  %v1937_v51 = vpop.f32.mrb[7].mxu0 }
 0xc6b   :  { %2169 = vtanh.f32 %v814_v50  ;;  %v1768_v53 = vmul.f32 -1.442695, %v814_v50 }
 0xc6d   :  { %2171 = vpow2.f32 %v1768_v53 }
 0xc75   :  { %v2170_v52 = vpop.eup %2169 }
 0xc76   :  { %827 = vrot.lane.b32.xlu0 %v2170_v52, %s2457_s22 }
 0xc77   :  { %v2172_v54 = vpop.eup %2171 }
 0xc78   :  { %v818_v55 = vadd.f32 1.0, %v2172_v54 }
 0xc7a   :  { %2173 = vrcp.f32 %v818_v55 }
 0xc84   :  { %v2174_v56 = vpop.eup %2173 }
 0xc85   :  { %v825_v60 = vmul.f32 %v2174_v56, %v823_v59 }
 0xce8   :  { %v828_v57 = vpop.permute.xlu0 %827 }
 0xce9   :  { %v830_v58 = vmul.f32 %v2174_v56, %v828_v57 }
 0xceb   :  { %832 = vrot.lane.b32.xlu1 %v830_v58, %s2457_s22 }
 0xd5d   :  { %v833_v61 = vpop.permute.xlu1 %832 }
 0xd5e   :  { %v835_v62 = vadd.f32 %v833_v61, %v825_v60 }
 0xd60   :  { %2175 = vtanh.f32 %v835_v62 }
 0xd6a   :  { %v2176_v63 = vpop.eup %2175 }
 0xd6b   :  { %838 = vrot.lane.b32.xlu0 %v2176_v63, %s2457_s22  ;;  %v138_v63 = vld [vmem:[#allocation12 + $0x10] sm:$0xff] }
 0xddd   :  { %v839_v2 = vpop.permute.xlu0 %838 }
 0xdde   :  { %v841_v3 = vmul.f32 %v2174_v56, %v839_v2 }
 0xde0   :  { %843 = vrot.lane.b32.xlu1 %v841_v3, %s2458_s4  ;;  %v139_v3 = vld [vmem:[#allocation12 + $0x18] sm:$0xff] }
 0xe52   :  { %v844_v4 = vpop.permute.xlu1 %843 }
 0xe53   :  { %1947 = vmatmul.mubr.msk.f32.vlgmr.msra.gmra.mrb[6].mxu1 %vm153_vm1, %v844_v4  ;;  %v2092_v4 = vpack.c.bf16 %v139_v3, %v138_v63 }
 0xe54   :  { %2084 = vmatpush3.bf16.msra.mxu1 %v2628_v12  ;;  %1968 = vmatprep.mubr.msk.f32.mxu1 %vm2455_vm0, %v2456_v1 }
 0xe55   :  { %2085 = vmatprep.subr.bf16.mxu1 %v2454_v0 }
 0xe58   :  { %2087 = vmatpush3.bf16.msra.mxu1 %v2633_v15  ;;  %v929_v15 = vrot.slane %v835_v62, 6  ;;  %v137_v62 = vld [vmem:[#allocation12 + $0x8] sm:$0xff] }
 0xe59   :  { %2094 = vmatprep.subr.bf16.mxu1 %v2454_v0 }
 0xf26   :  { %v913_v5 = vpop.f32.mrb[6].mxu1 }
 0xf27   :  { %v918_v6 = vrot.slane %v913_v5, 6  ;;  %v1948_v7 = vpop.f32.mrb[7].mxu1 }
 0xf29   :  { %v920_v8 = vadd.f32 %v918_v6, %v2650_v18 }
 0xf2b   :  { %2177 = vtanh.f32 %v920_v8  ;;  %v1770_v10 = vmul.f32 -1.442695, %v920_v8 }
 0xf2d   :  { %2179 = vpow2.f32 %v1770_v10  ;;  %v1758_v10 = vld [vmem:[%s2829_s7] ss:$0 sm:$0xff] }
 0xf35   :  { %v2178_v9 = vpop.eup %2177 }
 0xf36   :  { %933 = vrot.lane.b32.xlu0 %v2178_v9, %s2457_s22 }
 0xf37   :  { %v2180_v12 = vpop.eup %2179 }
 0xf38   :  { %v924_v11 = vadd.f32 1.0, %v2180_v12  ;;  %v2759_v12 = vadd.f32 %v1758_v10, %v2668_v44 }
 0xf3a   :  { %2181 = vrcp.f32 %v924_v11 }
 0xf44   :  { %v2182_v13 = vpop.eup %2181 }
 0xf45   :  { %v931_v17 = vmul.f32 %v2182_v13, %v929_v15 }
 0xfa8   :  { %v934_v14 = vpop.permute.xlu0 %933 }
 0xfa9   :  { %v936_v16 = vmul.f32 %v2182_v13, %v934_v14 }
 0xfab   :  { %938 = vrot.lane.b32.xlu1 %v936_v16, %s2457_s22 }
0x101d   :  { %v939_v19 = vpop.permute.xlu1 %938 }
0x101e   :  { %v941_v21 = vadd.f32 %v939_v19, %v931_v17 }
0x1020   :  { %2183 = vtanh.f32 %v941_v21  ;;  %v1036_v38 = vrot.slane %v941_v21, 6 }
0x102a   :  { %v2184_v22 = vpop.eup %2183 }
0x102b   :  { %944 = vrot.lane.b32.xlu0 %v2184_v22, %s2457_s22 }
0x109d   :  { %v945_v23 = vpop.permute.xlu0 %944 }
0x109e   :  { %v947_v24 = vmul.f32 %v2182_v13, %v945_v23 }
0x10a0   :  { %v949_v25 = vrot.slane %v947_v24, 2 }
0x10a2   :  { %950 = vrot.lane.b32.xlu1 %v949_v25, %s2458_s4 }
0x1114   :  { %v951_v26 = vpop.permute.xlu1 %950 }
0x1115   :  { %1958 = vmatmul.mubr.msk.f32.vlgmr.msra.gmra.mrb[8].mxu0 %vm153_vm1, %v951_v26 }
0x1116   :  { %1979 = vmatprep.mubr.msk.f32.mxu0 %vm2455_vm0, %v2456_v1 }
0x11e8   :  { %v1020_v27 = vpop.f32.mrb[8].mxu0 }
0x11e9   :  { %v1025_v28 = vrot.slane %v1020_v27, 4  ;;  %v1959_v29 = vpop.f32.mrb[9].mxu0 }
0x11eb   :  { %v1027_v30 = vadd.f32 %v1025_v28, %v2650_v18 }
0x11ed   :  { %2185 = vtanh.f32 %v1027_v30  ;;  %v1772_v32 = vmul.f32 -1.442695, %v1027_v30 }
0x11ef   :  { %2187 = vpow2.f32 %v1772_v32 }
0x11f7   :  { %v2186_v31 = vpop.eup %2185 }
0x11f8   :  { %1040 = vrot.lane.b32.xlu0 %v2186_v31, %s2457_s22 }
0x11f9   :  { %v2188_v33 = vpop.eup %2187 }
0x11fa   :  { %v1031_v34 = vadd.f32 1.0, %v2188_v33 }
0x11fc   :  { %2189 = vrcp.f32 %v1031_v34 }
0x1206   :  { %v2190_v35 = vpop.eup %2189 }
0x1207   :  { %v1038_v39 = vmul.f32 %v2190_v35, %v1036_v38 }
0x126a   :  { %v1041_v36 = vpop.permute.xlu0 %1040 }
0x126b   :  { %v1043_v37 = vmul.f32 %v2190_v35, %v1041_v36 }
0x126d   :  { %1045 = vrot.lane.b32.xlu1 %v1043_v37, %s2457_s22 }
0x12df   :  { %v1046_v40 = vpop.permute.xlu1 %1045 }
0x12e0   :  { %v1048_v41 = vadd.f32 %v1046_v40, %v1038_v39 }
0x12e2   :  { %2191 = vtanh.f32 %v1048_v41  ;;  %v1143_v58 = vrot.slane %v1048_v41, 6 }
0x12ec   :  { %v2192_v42 = vpop.eup %2191 }
0x12ed   :  { %1051 = vrot.lane.b32.xlu0 %v2192_v42, %s2457_s22 }
0x135f   :  { %v1052_v43 = vpop.permute.xlu0 %1051 }
0x1360   :  { %v1054_v20 = vmul.f32 %v2190_v35, %v1052_v43 }
0x1362   :  { %v1056_v45 = vrot.slane %v1054_v20, 4 }
0x1364   :  { %1057 = vrot.lane.b32.xlu1 %v1056_v45, %s2458_s4 }
0x13d6   :  { %v1058_v46 = vpop.permute.xlu1 %1057 }
0x13d7   :  { %1969 = vmatmul.mubr.msk.f32.vlgmr.msra.gmra.mrb[8].mxu1 %vm153_vm1, %v1058_v46 }
0x13d8   :  { %1990 = vmatprep.mubr.msk.f32.mxu1 %vm2455_vm0, %v2456_v1 }
0x14aa   :  { %v1127_v47 = vpop.f32.mrb[8].mxu1 }
0x14ab   :  { %v1132_v48 = vrot.slane %v1127_v47, 2  ;;  %v1970_v49 = vpop.f32.mrb[9].mxu1 }
0x14ad   :  { %v1134_v50 = vadd.f32 %v1132_v48, %v2650_v18  ;;  %v136_v18 = vld [vmem:[#allocation12] sm:$0xff] }
0x14ae   :  { %v2089_v2 = vpack.c.bf16 %v137_v62, %v136_v18 }
0x14af   :  { %2193 = vtanh.f32 %v1134_v50  ;;  %v1774_v52 = vmul.f32 -1.442695, %v1134_v50 }
0x14b0   :  { %2090 = vmatpush3.bf16.msra.mxu0 %v2089_v2  ;;  %2096 = vmatpush3.bf16.msra.mxu1 %v2089_v2 }
0x14b1   :  { %2195 = vpow2.f32 %v1774_v52  ;;  %2091 = vmatprep.subr.bf16.mxu0 %v2454_v0  ;;  %2097 = vmatprep.subr.bf16.mxu1 %v2454_v0 }
0x14b4   :  { %2093 = vmatpush3.bf16.msra.mxu0 %v2092_v4  ;;  %2099 = vmatpush3.bf16.msra.mxu1 %v2092_v4 }
0x14b5   :  { %2100 = vmatprep.subr.bf16.mxu0 %v2454_v0  ;;  %2106 = vmatprep.subr.bf16.mxu1 %v2454_v0 }
0x14b9   :  { %v2194_v51 = vpop.eup %2193 }
0x14ba   :  { %1147 = vrot.lane.b32.xlu0 %v2194_v51, %s2457_s22 }
0x14bb   :  { %v2196_v53 = vpop.eup %2195 }
0x14bc   :  { %v1138_v54 = vadd.f32 1.0, %v2196_v53 }
0x14be   :  { %2197 = vrcp.f32 %v1138_v54 }
0x14c8   :  { %v2198_v55 = vpop.eup %2197 }
0x14c9   :  { %v1145_v59 = vmul.f32 %v2198_v55, %v1143_v58 }
0x152c   :  { %v1148_v56 = vpop.permute.xlu0 %1147 }
0x152d   :  { %v1150_v57 = vmul.f32 %v2198_v55, %v1148_v56 }
0x152f   :  { %1152 = vrot.lane.b32.xlu1 %v1150_v57, %s2457_s22 }
0x15a1   :  { %v1153_v60 = vpop.permute.xlu1 %1152 }
0x15a2   :  { %v1155_v61 = vadd.f32 %v1153_v60, %v1145_v59 }
0x15a4   :  { %2199 = vtanh.f32 %v1155_v61  ;;  %v1247_v44 = vrot.slane %v1155_v61, 6 }
0x15ae   :  { %v2200_v5 = vpop.eup %2199 }
0x15af   :  { %1158 = vrot.lane.b32.xlu0 %v2200_v5, %s2457_s22 }
0x1621   :  { %v1159_v6 = vpop.permute.xlu0 %1158 }
0x1622   :  { %v1161_v7 = vmul.f32 %v2198_v55, %v1159_v6 }
0x1624   :  { %v1163_v8 = vrot.slane %v1161_v7, 6 }
0x1626   :  { %1164 = vrot.lane.b32.xlu1 %v1163_v8, %s2458_s4 }
0x1698   :  { %v1165_v9 = vpop.permute.xlu1 %1164 }
0x1699   :  { %1980 = vmatmul.mubr.msk.f32.vlgmr.msra.gmra.mrb[10].mxu0 %vm153_vm1, %v1165_v9 }
0x169a   :  { %2102 = vmatpush3.bf16.msra.mxu0 %v2089_v2  ;;  %2001 = vmatprep.mubr.msk.f32.mxu0 %vm2455_vm0, %v2456_v1 }
0x169b   :  { %2103 = vmatprep.subr.bf16.mxu0 %v2454_v0 }
0x169e   :  { %2105 = vmatpush3.bf16.msra.mxu0 %v2092_v4 }
0x169f   :  { %2112 = vmatprep.subr.bf16.mxu0 %v2454_v0 }
0x176c   :  { %v1234_v11 = vpop.f32.mrb[10].mxu0 }
0x176d   :  { %v1238_v13 = vadd.f32 %v1234_v11, %v2759_v12  ;;  %v1981_v14 = vpop.f32.mrb[11].mxu0 }
0x176f   :  { %2201 = vtanh.f32 %v1238_v13  ;;  %v1776_v15 = vmul.f32 -1.442695, %v1238_v13 }
0x1771   :  { %2203 = vpow2.f32 %v1776_v15 }
0x1779   :  { %v2202_v16 = vpop.eup %2201 }
0x177a   :  { %1251 = vrot.lane.b32.xlu0 %v2202_v16, %s2457_s22 }
0x177b   :  { %v2204_v17 = vpop.eup %2203 }
0x177c   :  { %v1242_v19 = vadd.f32 1.0, %v2204_v17 }
0x177e   :  { %2205 = vrcp.f32 %v1242_v19 }
0x1788   :  { %v2206_v21 = vpop.eup %2205 }
0x1789   :  { %v1249_v24 = vmul.f32 %v2206_v21, %v1247_v44 }
0x17ec   :  { %v1252_v22 = vpop.permute.xlu0 %1251 }
0x17ed   :  { %v1254_v23 = vmul.f32 %v2206_v21, %v1252_v22 }
0x17ef   :  { %1256 = vrot.lane.b32.xlu1 %v1254_v23, %s2457_s22 }
0x1861   :  { %v1257_v25 = vpop.permute.xlu1 %1256 }
0x1862   :  { %v1259_v26 = vadd.f32 %v1257_v25, %v1249_v24  ;;  %v1606_v25 = vld [vmem:[#allocation14] sm:$0xff] }
0x1864   :  { %2207 = vtanh.f32 %v1259_v26  ;;  %v1356_v42 = vrot.slane %v1259_v26, 6  ;;  %v1607_v26 = vld [vmem:[#allocation14 + $0x8] sm:$0xff] }
0x186e   :  { %v2208_v27 = vpop.eup %2207 }
0x186f   :  { %1262 = vrot.lane.b32.xlu0 %v2208_v27, %s2457_s22  ;;  %v2113_v27 = vpack.c.bf16 %v1607_v26, %v1606_v25 }
0x18e1   :  { %v1263_v28 = vpop.permute.xlu0 %1262 }
0x18e2   :  { %v1265_v29 = vmul.f32 %v2206_v21, %v1263_v28  ;;  %v1608_v28 = vld [vmem:[#allocation14 + $0x10] sm:$0xff] }
0x18e4   :  { %1267 = vrot.lane.b32.xlu1 %v1265_v29, %s2458_s4  ;;  %v1609_v29 = vld [vmem:[#allocation14 + $0x18] sm:$0xff] }
0x1956   :  { %v1268_v30 = vpop.permute.xlu1 %1267 }
0x1957   :  { %1271 = vst.msk [vmem:[#allocation2] sm:$0x3] %vm1270_vm2, %v1268_v30  ;;  %1991 = vmatmul.mubr.msk.f32.vlgmr.msra.gmra.mrb[10].mxu1 %vm153_vm1, %v1268_v30  ;;  %v2116_v30 = vpack.c.bf16 %v1609_v29, %v1608_v28 }
0x1958   :  { %2108 = vmatpush3.bf16.msra.mxu1 %v2089_v2  ;;  %2012 = vmatprep.mubr.msk.f32.mxu1 %vm2455_vm0, %v2456_v1 }
0x1959   :  { %2109 = vmatprep.subr.bf16.mxu1 %v2454_v0 }
0x195c   :  { %2111 = vmatpush3.bf16.msra.mxu1 %v2092_v4 }
0x1a2a   :  { %v1340_v31 = vpop.f32.mrb[10].mxu1 }
0x1a2b   :  { %v1345_v32 = vrot.slane %v1340_v31, 6  ;;  %v1992_v33 = vpop.f32.mrb[11].mxu1 }
0x1a2d   :  { %v1347_v34 = vadd.f32 %v1345_v32, %v2759_v12 }
0x1a2f   :  { %2209 = vtanh.f32 %v1347_v34  ;;  %v1778_v36 = vmul.f32 -1.442695, %v1347_v34 }
0x1a31   :  { %2211 = vpow2.f32 %v1778_v36  ;;  %v1783_v36 = vld [vmem:[%s2831_s9] ss:$0 sm:$0xff]  ;;  %s2460_s9 = smov [#allocation15]  }
0x1a32   :  { %s1729_s26 = sshll.u32 %s2460_s9, 4  ;;  %s1730_s26 = int_to_ptr.vmem [resolvable:$true] %s1729_s26 }
0x1a33   :  { %s2389_s27 = scalar_lea.vmem %s1730_s26, 128  ;;  %p2394_p1 = scmp.lt.s32.totalorder %s1730_s26, %s1730_s26 }
0x1a34   :  { %p2390_p0 = scmp.ne.s32.totalorder %s1730_s26, %s2389_s27  ;;  %p2395_p2 = scmp.lt.s32.totalorder %s2389_s27, %s2389_s27 }
0x1a36   :  { %p2396_p3 = por %p2395_p2, %p2394_p1 }
0x1a38   :  { %p2397_p4 = pnand %p2396_p3, %p2390_p0 }
0x1a39   :  { %v2210_v35 = vpop.eup %2209 }
0x1a3a   :  { %1360 = vrot.lane.b32.xlu0 %v2210_v35, %s2457_s22 }
0x1a3b   :  { %v2212_v37 = vpop.eup %2211 }
0x1a3c   :  { %v1351_v38 = vadd.f32 1.0, %v2212_v37 }
0x1a3e   :  { %2213 = vrcp.f32 %v1351_v38 }
0x1a48   :  { %v2214_v39 = vpop.eup %2213 }
0x1a49   :  { %v1358_v43 = vmul.f32 %v2214_v39, %v1356_v42 }
0x1aac   :  { %v1361_v40 = vpop.permute.xlu0 %1360 }
0x1aad   :  { %v1363_v41 = vmul.f32 %v2214_v39, %v1361_v40 }
0x1aaf   :  { %1365 = vrot.lane.b32.xlu1 %v1363_v41, %s2457_s22 }
0x1b21   :  { %v1366_v20 = vpop.permute.xlu1 %1365 }
0x1b22   :  { %v1368_v45 = vadd.f32 %v1366_v20, %v1358_v43 }
0x1b24   :  { %2215 = vtanh.f32 %v1368_v45 }
0x1b2e   :  { %v2216_v46 = vpop.eup %2215 }
0x1b2f   :  { %1371 = vrot.lane.b32.xlu0 %v2216_v46, %s2457_s22 }
0x1ba1   :  { %v1372_v47 = vpop.permute.xlu0 %1371 }
0x1ba2   :  { %v1374_v48 = vmul.f32 %v2214_v39, %v1372_v47 }
0x1ba4   :  { %v1381_v49 = vrot.slane %v1374_v48, 2 }
0x1ba6   :  { %1382 = vrot.lane.b32.xlu1 %v1381_v49, %s2458_s4 }
0x1c18   :  { %v1383_v50 = vpop.permute.xlu1 %1382 }
0x1c19   :  { %2002 = vmatmul.mubr.msk.f32.vlgmr.msra.gmra.mrb[12].mxu0 %vm153_vm1, %v1383_v50 }
0x1c1a   :  { %2023 = vmatprep.mubr.msk.f32.mxu0 %vm2455_vm0, %v2456_v1  ;;  %v1468_v1 = vrot.slane %v1368_v45, 6  ;;  %2114 = vmatpush3.bf16.msra.mxu0 %v2113_v27 }
0x1c1b   :  { %2115 = vmatprep.subr.bf16.mxu0 %v2454_v0 }
0x1c1e   :  { %2117 = vmatpush3.bf16.msra.mxu0 %v2116_v30 }
0x1cec   :  { %v1452_v51 = vpop.f32.mrb[12].mxu0 }
0x1ced   :  { %v1457_v52 = vrot.slane %v1452_v51, 4  ;;  %v2003_v53 = vpop.f32.mrb[13].mxu0 }
0x1cef   :  { %v1459_v54 = vadd.f32 %v1457_v52, %v2759_v12 }
0x1cf1   :  { %2217 = vtanh.f32 %v1459_v54  ;;  %v1780_v56 = vmul.f32 -1.442695, %v1459_v54 }
0x1cf3   :  { %2219 = vpow2.f32 %v1780_v56 }
0x1cfb   :  { %v2218_v55 = vpop.eup %2217 }
0x1cfc   :  { %1472 = vrot.lane.b32.xlu0 %v2218_v55, %s2457_s22 }
0x1cfd   :  { %v2220_v57 = vpop.eup %2219 }
0x1cfe   :  { %v1463_v58 = vadd.f32 1.0, %v2220_v57 }
0x1d00   :  { %2221 = vrcp.f32 %v1463_v58 }
0x1d0a   :  { %v2222_v59 = vpop.eup %2221 }
0x1d0b   :  { %v1470_v18 = vmul.f32 %v2222_v59, %v1468_v1 }
0x1d6e   :  { %v1473_v60 = vpop.permute.xlu0 %1472 }
0x1d6f   :  { %v1475_v61 = vmul.f32 %v2222_v59, %v1473_v60 }
0x1d71   :  { %1477 = vrot.lane.b32.xlu1 %v1475_v61, %s2457_s22 }
0x1de3   :  { %v1478_v62 = vpop.permute.xlu1 %1477 }
0x1de4   :  { %v1480_v63 = vadd.f32 %v1478_v62, %v1470_v18 }
0x1de6   :  { %2223 = vtanh.f32 %v1480_v63  ;;  %v1580_v21 = vrot.slane %v1480_v63, 6 }
0x1df0   :  { %v2224_v2 = vpop.eup %2223 }
0x1df1   :  { %1483 = vrot.lane.b32.xlu0 %v2224_v2, %s2457_s22 }
0x1e63   :  { %v1484_v3 = vpop.permute.xlu0 %1483 }
0x1e64   :  { %v1486_v4 = vmul.f32 %v2222_v59, %v1484_v3 }
0x1e66   :  { %v1493_v5 = vrot.slane %v1486_v4, 4 }
0x1e68   :  { %1494 = vrot.lane.b32.xlu1 %v1493_v5, %s2458_s4 }
0x1eda   :  { %v1495_v6 = vpop.permute.xlu1 %1494 }
0x1edb   :  { %2013 = vmatmul.mubr.msk.f32.vlgmr.msra.gmra.mrb[12].mxu1 %vm153_vm1, %v1495_v6 }
0x1fae   :  { %v1564_v7 = vpop.f32.mrb[12].mxu1 }
0x1faf   :  { %v1569_v8 = vrot.slane %v1564_v7, 2  ;;  %v2014_v9 = vpop.f32.mrb[13].mxu1 }
0x1fb1   :  { %v1571_v10 = vadd.f32 %v1569_v8, %v2759_v12 }
0x1fb3   :  { %2225 = vtanh.f32 %v1571_v10  ;;  %v1782_v13 = vmul.f32 -1.442695, %v1571_v10 }
0x1fb5   :  { %2227 = vpow2.f32 %v1782_v13 }
0x1fbd   :  { %v2226_v11 = vpop.eup %2225 }
0x1fbe   :  { %1584 = vrot.lane.b32.xlu0 %v2226_v11, %s2457_s22 }
0x1fbf   :  { %v2228_v14 = vpop.eup %2227 }
0x1fc0   :  { %v1575_v16 = vadd.f32 1.0, %v2228_v14 }
0x1fc2   :  { %2229 = vrcp.f32 %v1575_v16 }
0x1fcc   :  { %v2230_v15 = vpop.eup %2229 }
0x1fcd   :  { %v1582_v22 = vmul.f32 %v2230_v15, %v1580_v21 }
0x2030   :  { %v1585_v17 = vpop.permute.xlu0 %1584 }
0x2031   :  { %v1587_v19 = vmul.f32 %v2230_v15, %v1585_v17 }
0x2033   :  { %1589 = vrot.lane.b32.xlu1 %v1587_v19, %s2457_s22 }
0x2037   :  { %1376 = vrot.lane.b32.xlu1 %v1374_v48, %s2458_s4 }
0x20a5   :  { %v1590_v23 = vpop.permute.xlu1 %1589 }
0x20a6   :  { %v1592_v12 = vadd.f32 %v1590_v23, %v1582_v22 }
0x20a8   :  { %2231 = vtanh.f32 %v1592_v12 }
0x20a9   :  { %v1377_v44 = vpop.permute.xlu1 %1376 }
0x20aa   :  { %1380 = vst.msk [vmem:[#allocation2] sm:$0xc] %vm1379_vm3, %v1377_v44 }
0x20b2   :  { %v2232_v24 = vpop.eup %2231 }
0x20b3   :  { %1595 = vrot.lane.b32.xlu0 %v2232_v24, %s2457_s22 }
0x20b7   :  { %1488 = vrot.lane.b32.xlu0 %v1486_v4, %s2458_s4 }
0x2125   :  { %v1596_v31 = vpop.permute.xlu0 %1595 }
0x2126   :  { %v1598_v32 = vmul.f32 %v2230_v15, %v1596_v31 }
0x2128   :  { %1600 = vrot.lane.b32.xlu1 %v1598_v32, %s2458_s4 }
0x2129   :  { %v1489_v33 = vpop.permute.xlu0 %1488 }
0x212a   :  { %1492 = vst.msk [vmem:[#allocation2] sm:$0x30] %vm1491_vm4, %v1489_v33 }
0x219a   :  { %v1601_v34 = vpop.permute.xlu1 %1600 }
0x219b   :  { %1604 = vst.msk [vmem:[#allocation2] sm:$0xc0] %vm1603_vm5, %v1601_v34 }
0x21a2   :  { %v1605_v35 = vld [vmem:[#allocation2] sm:$0xff] }
0x21a3   :  { %2024 = vmatmul.mubr.msk.f32.vlgmr.msra.gmra.mrb[14].mxu0 %vm153_vm1, %v1605_v35 }
0x2276   :  { %v1686_v37 = vpop.f32.mrb[14].mxu0 }
0x2277   :  { %v1687_v0 = vadd.f32 %v1783_v36, %v1686_v37  ;;  %v2025_v38 = vpop.f32.mrb[15].mxu0 }
0x2279   :  { %v1693_v39 = vmul.f32 %v1687_v0, %v1687_v0  ;;  %1691 = vst.msk [vmem:[#allocation15] sm:$0xff] %vm1690_vm6, %v1687_v0  ;;  %v1699_v40 = vmul.f32 1.442695, %v1687_v0  ;;  %v1692_v41 = vadd.f32 1.0, %v1687_v0 }
0x227b   :  { %1695 = vrot.lane.b32.xlu0 %v1693_v39, %s2457_s22  ;;  %2233 = vpow2.f32 %v1699_v40 }
0x2285   :  { %v2234_v20 = vpop.eup %2233 }
0x22ed   :  { %v1696_v42 = vpop.permute.xlu0 %1695 }
0x22ee   :  { %v1698_v43 = vsub.f32 %v1692_v41, %v1696_v42 }
0x22f0   :  { %v1701_v45 = vsub.f32 %v1698_v43, %v2234_v20 }
0x22f2   :  { %1703 = vrot.lane.b32.xlu1 %v1701_v45, %s2459_s25 }
0x2364   :  { %v1704_v46 = vpop.permute.xlu1 %1703 }
0x2365   :  { %v1706_v47 = vsel %vm153_vm1, %v1704_v46, 0.0 }
0x2366   :  { %1707 = vadd.xlane.f32.xlu0 %v1706_v47 }
0x2367   :  { %2400 = shalt.err (!%p2397_p4)
}
0x2368   :  { %s2401_s28 = scalar_lea.hbm %s2832_s10, 128 }
0x2369   :  { %p2402_p5 = scmp.ne.s32.totalorder %s2832_s10, %s2401_s28  ;;  %p2405_p6 = scmp.lt.u32.totalorder %s2401_s28, %s2832_s10 }
0x236b   :  { %p2407_p7 = pnand %p2405_p6, %p2402_p5 }
0x236d   :  { %2410 = shalt.err (!%p2407_p7)
}
0x236e   :  { %1732 = dma.vmem_to_hbm [thread:$0]  %s1730_s26, 128, %s2832_s10, [#allocation5]   ;;  %vm1721_vm7 = vcmask 0  }
0x236f   :  { %s2461_s16 = smov [#allocation16]  }
0x2370   :  { %s1739_s19 = sshll.u32 %s2461_s16, 4  ;;  %s1740_s19 = int_to_ptr.vmem [resolvable:$true] %s1739_s19 }
0x2371   :  { %s2411_s17 = scalar_lea.vmem %s1740_s19, 16  ;;  %s2415_s10 = scalar_lea.vmem %s1740_s19, 32 }
0x2372   :  { %p2412_p8 = scmp.ne.s32.totalorder %s1740_s19, %s2411_s17  ;;  %p2416_p9 = scmp.lt.s32.totalorder %s1740_s19, %s1740_s19 }
0x2373   :  { %p2417_p10 = scmp.lt.s32.totalorder %s2415_s10, %s2411_s17 }
0x2375   :  { %p2418_p11 = por %p2417_p10, %p2416_p9 }
0x2377   :  { %p2419_p12 = pnand %p2418_p11, %p2412_p8 }
0x23f3   :  { %v1708_v48 = vpop.xlane.xlu0 %1707 }
0x23f4   :  { %v1709_v49 = vrot.slane %v1708_v48, 4 }
0x23f6   :  { %v1710_v50 = vadd.f32 %v1709_v49, %v1708_v48 }
0x23f8   :  { %v1711_v51 = vrot.slane %v1710_v50, 2 }
0x23fa   :  { %v1712_v52 = vadd.f32 %v1711_v51, %v1710_v50 }
0x23fc   :  { %v1713_v53 = vrot.slane %v1712_v52, 1 }
0x23fe   :  { %v1714_v54 = vadd.f32 %v1713_v53, %v1712_v52 }
0x2400   :  { %2118 = vpush %v1714_v54 }
0x2431   :  { %s2119_s3 = spop %2118 }
0x2432   :  { %s1716_s30 = smul.f32 -0.5, %s2119_s3 }
0x2434   :  { %s1719_s0 = smul.f32 0.00390625, %s1716_s30 }
0x2436   :  { %v1720_v55 = vstv %s1719_s0 }
0x2437   :  { %1722 = vst.msk [vmem:[#allocation16] sm:$0x1] %vm1721_vm7, %v1720_v55 }
0x2438   :  { %2422 = shalt.err (!%p2419_p12)
}
0x2439   :  { %s2423_s8 = scalar_lea.hbm %s2833_s11, 16 }
0x243a   :  { %p2424_p13 = scmp.ne.s32.totalorder %s2833_s11, %s2423_s8  ;;  %p2427_p0 = scmp.lt.u32.totalorder %s2423_s8, %s2833_s11 }
0x243c   :  { %p2429_p1 = pnand %p2427_p0, %p2424_p13 }
0x243e   :  { %2432 = shalt.err (!%p2429_p1)
}
0x243f   :  { %1742 = dma.vmem_to_hbm [thread:$0]  %s1740_s19, 16, %s2833_s11, [#allocation17]  }
0x2440   :  { %2441 = dma.done.wait [#allocation5], 128  }
0x2441   :  { %2442 = vsyncadd [#allocation5], 4294967168 }
0x2442   :  { %2443 = dma.done.wait [#allocation17], 16  }
0x2443   :  { %2444 = vsyncadd [#allocation17], 4294967280 }
0x2444   :  { %1749 = vsyncpa [#allocation4], 1 }
0x2445   :  { %1750 = vsyncpa [#allocation7], 1 }
0x2446   :  { %1751 = vsyncpa [#allocation10], 1 }
0x2447   :  { %1752 = vsyncpa [#allocation13], 1 }
0x2448   :  { %1753 = vsyncpa [#allocation5], 1 }
0x2449   :  { %1754 = vsyncpa [#allocation17], 1 }

</bundles_post_ra>
